<compile_context>
chip_gen: v6e
topology: v6e:2x2x1
jax: 0.10.0
libtpu: 0.0.40
codegen_flags: <defaults>
</compile_context>

<pallas_src>
import math
import jax
import jax.numpy as jnp
from jax.experimental import pallas as pl
from jax.experimental.pallas import tpu as pltpu


# ----------------------------- Pallas kernel --------------------------------

def _make_gconv_kernel(Bt, H, W, C, G, P, mm_dtype):
    """Kernel closure for a (Bt, H, W, C) tile.

    Layouts:
      x_ref / o_ref : (Bt*H, W*C)   lane-dense slabs (lane index = w*C + c)
      wvg_ref       : (G*C, 2*G*C)  block-diag [Wv | Wg] fused 1x1 weight
      wp_ref        : (G*C, G*C)    block-diag proj 1x1 weight
      dw_ref        : (9, W*C)      depthwise 3x3 weights pre-tiled along W
      pad_ref       : (Bt, H+2, SW) VMEM scratch for the reflect-padded Wv output;
                      interior starts at 128-aligned lane offset P.
    """
    WC = W * C
    GC = G * C
    Mp = (Bt * H * W) // G          # packed-pixel rows (G pixels per 128-lane row)

    def kernel(x_ref, wvg_ref, bvg_ref, dw_ref, bdw_ref, wp_ref, bp_ref,
               o_ref, pad_ref):
        # ---- fused Wv|Wg 1x1 convs: packed (Mp, GC) @ block-diag (GC, 2GC) ----
        xp = x_ref[...].reshape(Mp, GC).astype(mm_dtype)       # lane-full rows
        vg = jnp.dot(xp, wvg_ref[...],
                     preferred_element_type=jnp.float32) + bvg_ref[0]
        v = vg[:, :GC]                      # Wv output (128-aligned slice)
        g = jax.nn.sigmoid(vg[:, GC:])      # gate, stays in packed layout (f32)

        # ---- reflect padding into the VMEM scratch (lane-flattened rows) ----
        v3 = v.reshape(Bt, H, WC)                        # lane index = w*C + c
        left = v3[:, :, C:2 * C]                         # w = -1 -> w = 1
        right = v3[:, :, (W - 2) * C:(W - 1) * C]        # w = W  -> w = W-2
        pad_ref[:, 1:H + 1, P:P + WC] = v3               # interior (lane-aligned)
        pad_ref[:, 1:H + 1, P - C:P] = left
        pad_ref[:, 1:H + 1, P + WC:P + WC + C] = right
        # top (h=-1 -> h=1) and bottom (h=H -> h=H-2) rows, written from v3 directly
        pad_ref[:, 0:1, P:P + WC] = v3[:, 1:2]
        pad_ref[:, 0:1, P - C:P] = left[:, 1:2]
        pad_ref[:, 0:1, P + WC:P + WC + C] = right[:, 1:2]
        pad_ref[:, H + 1:H + 2, P:P + WC] = v3[:, H - 2:H - 1]
        pad_ref[:, H + 1:H + 2, P - C:P] = left[:, H - 2:H - 1]
        pad_ref[:, H + 1:H + 2, P + WC:P + WC + C] = right[:, H - 2:H - 1]

        # ---- depthwise 3x3: 9 shifted f32 MACs on lane-dense (H, W*C) rows ----
        dw = dw_ref[...]                                 # (9, WC), loaded once
        acc = jnp.zeros((Bt, H, WC), jnp.float32)
        for ky in range(3):
            for kx in range(3):
                base = P + (kx - 1) * C                  # static lane offset
                tap = pad_ref[:, ky:ky + H, base:base + WC]
                acc = acc + tap * dw[ky * 3 + kx]
        acc = acc + bdw_ref[0]

        # ---- sigmoid gate + proj 1x1 (packed-pixel, block-diag weight) ----
        gated = (acc.reshape(Mp, GC) * g).astype(mm_dtype)
        out = jnp.dot(gated, wp_ref[...],
                      preferred_element_type=jnp.float32) + bp_ref[0]
        o_ref[...] = out.reshape(Bt * H, WC).astype(o_ref.dtype)

    return kernel


# ------------------------------ wrapper --------------------------------------

def gconv_block_pallas(x_nchw, params, *, batch_tiles=None,
                       matmul_dtype=jnp.bfloat16):
    """x_nchw: (B, C, H, W) float32 -> (B, C, H, W) float32.

    batch_tiles=None (default) gives one batch image per grid step (pipelined,
    'parallel' axis for both v7x TCs); batch_tiles=1 folds the batch into a
    single step.  matmul_dtype selects the MXU operand dtype for the 1x1 convs.
    """
    B, C, H, W = x_nchw.shape
    assert H >= 2 and W >= 2, "reflect padding with kernel_size=3 needs H, W >= 2"
    if batch_tiles is None:
        batch_tiles = B
    assert B % batch_tiles == 0
    Bt = B // batch_tiles
    assert batch_tiles == 1 or (Bt * H) % 8 == 0, "row block must be sublane aligned"
    WC = W * C

    # Pixel packing factor: G pixels per 128-lane row when C divides 128.
    G = 128 // C if (C < 128 and 128 % C == 0) else 1
    if (Bt * H * W) % G != 0:
        G = 1
    GC = G * C

    P = -(-C // 128) * 128                      # 128-aligned padded-interior offset
    SW = -(-(P + WC + C) // 128) * 128          # scratch lane width (multiple of 128)

    # NCHW -> lane-dense (B*H, W*C) slab (lane index = w*C + c).
    # TODO(synk): drop both transposes if the surrounding model carries NHWC.
    x = jnp.transpose(x_nchw, (0, 2, 3, 1)).reshape(B * H, WC)

    # Block-diagonal 1x1 weights (G copies on the diagonal); Wv|Wg fused.
    eye = jnp.eye(G, dtype=jnp.float32)
    bd = lambda w: jnp.kron(eye, w)                                  # (C,C)->(GC,GC)
    wvg = jnp.concatenate([bd(params["wv1"]), bd(params["wg1"])],
                          axis=1).astype(matmul_dtype)               # (GC, 2GC)
    bvg = jnp.concatenate([jnp.tile(params["bv1"], (1, G)),
                           jnp.tile(params["bg1"], (1, G))], axis=1)  # (1, 2GC) f32
    wp = bd(params["wp"]).astype(matmul_dtype)                       # (GC, GC)
    bp = jnp.tile(params["bp"], (1, G))                              # (1, GC)  f32
    dw_t = jnp.tile(params["dw"], (1, W))                            # (9, WC)  f32
    bdw_t = jnp.tile(params["bdw"], (1, W))                          # (1, WC)  f32

    kernel = _make_gconv_kernel(Bt, H, W, C, G, P, matmul_dtype)
    rep = lambda shape: pl.BlockSpec(shape, lambda i: (0,) * len(shape))

    # Advisory cost estimate + explicit per-step VMEM budget.
    flops = int(6 * B * H * W * G * C * C + 19 * B * H * W * C)
    bytes_accessed = int(8 * B * H * W * C + 4 * (wvg.size + wp.size + dw_t.size))
    blk = Bt * H * WC * 4
    need = 4 * blk + Bt * (H + 2) * SW * 4 + 8 * blk   # dbl-buffered IO + scratch + temps
    # TODO(synk): on v7x (64 MiB VMEM/core) keep the per-step tile <= ~24-28 MiB.
    vmem_limit = int(max(4 * need, 16 * 2 ** 20))

    out = pl.pallas_call(
        kernel,
        out_shape=jax.ShapeDtypeStruct((B * H, WC), x.dtype),
        grid=(batch_tiles,),
        in_specs=[
            pl.BlockSpec((Bt * H, WC), lambda i: (i, 0)),   # x slab (lane-dense)
            rep((GC, 2 * GC)), rep((1, 2 * GC)),            # fused Wv|Wg (block-diag)
            rep((9, WC)), rep((1, WC)),                     # tiled depthwise 3x3
            rep((GC, GC)), rep((1, GC)),                    # proj 1x1 (block-diag)
        ],
        out_specs=pl.BlockSpec((Bt * H, WC), lambda i: (i, 0)),
        scratch_shapes=[pltpu.VMEM((Bt, H + 2, SW), jnp.float32)],
        compiler_params=pltpu.CompilerParams(
            dimension_semantics=("parallel",),
            vmem_limit_bytes=vmem_limit),
        cost_estimate=pl.CostEstimate(flops=flops,
                                      transcendentals=int(B * H * W * C),
                                      bytes_accessed=bytes_accessed),
    )(x, wvg, bvg, dw_t, bdw_t, wp, bp)

    return jnp.transpose(out.reshape(B, H, W, C), (0, 3, 1, 2))   # -> NCHW


# ------------------------ deterministic parameter init ----------------------

def init_params(key, dim, kernel_size=3, net_depth=8):
    """Mimics gConvBlock._init_weights: trunc_normal(std=gain*sqrt(2/(fan_in+fan_out))),
    zero bias.  1x1 weights stored as (Cin, Cout); depthwise weight as (kH*kW, C)."""
    gain = (8 * net_depth) ** (-1 / 4)
    ks = jax.random.split(key, 4)

    def trunc(k, shape, std):
        return jax.random.truncated_normal(k, -2.0, 2.0, shape, jnp.float32) * std

    std_pw = gain * math.sqrt(2.0 / float(dim + dim))
    std_dw = gain * math.sqrt(2.0 / float(kernel_size * kernel_size
                                          + dim * kernel_size * kernel_size))
    zeros_c = jnp.zeros((1, dim), jnp.float32)
    return {
        "wv1": trunc(ks[0], (dim, dim), std_pw), "bv1": zeros_c,
        "dw":  trunc(ks[1], (kernel_size * kernel_size, dim), std_dw), "bdw": zeros_c,
        "wg1": trunc(ks[2], (dim, dim), std_pw), "bg1": zeros_c,
        "wp":  trunc(ks[3], (dim, dim), std_pw), "bp":  zeros_c,
    }


# ------------------------------ reference (pure JAX) -------------------------

def gconv_block_ref(x_nchw, params):
    x = jnp.transpose(x_nchw, (0, 2, 3, 1))            # NHWC
    B, H, W, C = x.shape
    v = jnp.einsum("bhwc,cd->bhwd", x, params["wv1"]) + params["bv1"][0]
    vp = jnp.pad(v, ((0, 0), (1, 1), (1, 1), (0, 0)), mode="reflect")
    acc = jnp.zeros_like(v)
    for ky in range(3):
        for kx in range(3):
            acc = acc + vp[:, ky:ky + H, kx:kx + W, :] * params["dw"][ky * 3 + kx]
    acc = acc + params["bdw"][0]
    g = jax.nn.sigmoid(jnp.einsum("bhwc,cd->bhwd", x, params["wg1"]) + params["bg1"][0])
    out = jnp.einsum("bhwc,cd->bhwd", acc * g, params["wp"]) + params["bp"][0]
    return jnp.transpose(out, (0, 3, 1, 2))


# ----------------------------------- main ------------------------------------

if __name__ == "__main__":
    key = jax.random.PRNGKey(0)
    k_x, k_p = jax.random.split(key)

    B, C, H, W = 2, 32, 16, 16          # dim=32 -> 4 pixels packed per 128-lane row
    x = jax.random.normal(k_x, (B, C, H, W), jnp.float32)
    params = init_params(k_p, dim=C, kernel_size=3, net_depth=8)

    ref = gconv_block_ref(x, params)

    # Tolerance: bf16 MXU operands (and TPU default-precision reference matmuls)
    # bound the error well below atol=2e-3 / rtol=2e-2 at these magnitudes, while
    # any structural bug (reflect/packing/weights) produces O(|out|) errors.
    RTOL, ATOL = 2e-2, 2e-3

    # Default fast path: bf16 MXU operands, one image per "parallel" grid step.
    out = jax.block_until_ready(gconv_block_pallas(x, params))
    assert out.shape == (B, C, H, W)
    assert jnp.allclose(out, ref, rtol=RTOL, atol=ATOL), "Pallas mismatch (bf16 path)"

    # Exact-dtype path, whole batch folded into a single grid step.
    out32 = jax.block_until_ready(
        gconv_block_pallas(x, params, batch_tiles=1, matmul_dtype=jnp.float32))
    assert jnp.allclose(out32, ref, rtol=RTOL, atol=ATOL), "Pallas mismatch (f32 path)"

    print("KERNEL_OK")
</pallas_src>

<mosaic_0001>
module attributes {stable_mosaic.version = 11 : i64} {
  func.func @kernel(%arg0: i32, %arg1: memref<16x512xf32, #tpu.memory_space<vmem>>, %arg2: memref<128x256xbf16, #tpu.memory_space<vmem>>, %arg3: memref<1x256xf32, #tpu.memory_space<vmem>>, %arg4: memref<9x512xf32, #tpu.memory_space<vmem>>, %arg5: memref<1x512xf32, #tpu.memory_space<vmem>>, %arg6: memref<128x128xbf16, #tpu.memory_space<vmem>>, %arg7: memref<1x128xf32, #tpu.memory_space<vmem>>, %arg8: memref<16x512xf32, #tpu.memory_space<vmem>>, %arg9: memref<1x18x768xf32, #tpu.memory_space<vmem>>) attributes {dimension_semantics = [#tpu.dimension_semantics<parallel>], iteration_bounds = array<i64: 2>, scalar_prefetch = 0 : i64, scratch_operands = 1 : i64, tpu.core_type = #tpu.core_type<tc>, window_params = [{transform_indices = @transform_0, window_bounds = array<i64: 16, 512>}, {pipeline_mode = #tpu.pipeline_mode<synchronous>, transform_indices = @transform_1, window_bounds = array<i64: 128, 256>}, {pipeline_mode = #tpu.pipeline_mode<synchronous>, transform_indices = @transform_2, window_bounds = array<i64: 1, 256>}, {pipeline_mode = #tpu.pipeline_mode<synchronous>, transform_indices = @transform_3, window_bounds = array<i64: 9, 512>}, {pipeline_mode = #tpu.pipeline_mode<synchronous>, transform_indices = @transform_4, window_bounds = array<i64: 1, 512>}, {pipeline_mode = #tpu.pipeline_mode<synchronous>, transform_indices = @transform_5, window_bounds = array<i64: 128, 128>}, {pipeline_mode = #tpu.pipeline_mode<synchronous>, transform_indices = @transform_6, window_bounds = array<i64: 1, 128>}, {transform_indices = @transform_7, window_bounds = array<i64: 16, 512>}]} {
    %c0 = arith.constant 0 : index
    %c0_0 = arith.constant 0 : index
    %0 = vector.load %arg1[%c0, %c0_0] : memref<16x512xf32, #tpu.memory_space<vmem>>, vector<16x512xf32>
    %1 = vector.shape_cast %0 : vector<16x512xf32> to vector<64x128xf32>
    %2 = arith.truncf %1 : vector<64x128xf32> to vector<64x128xbf16>
    %c0_1 = arith.constant 0 : index
    %c0_2 = arith.constant 0 : index
    %3 = vector.load %arg2[%c0_1, %c0_2] : memref<128x256xbf16, #tpu.memory_space<vmem>>, vector<128x256xbf16>
    %cst = arith.constant dense<0.000000e+00> : vector<64x256xf32>
    %4 = tpu.matmul %2, %3, %cst {dimension_numbers = #tpu.dot_dimension_numbers<[1], [0], [0], [1], [0, 0, 1, 1], [], []>} : vector<64x128xbf16>, vector<128x256xbf16>, vector<64x256xf32> -> vector<64x256xf32>
    %c0_3 = arith.constant 0 : index
    %c0_4 = arith.constant 0 : index
    %5 = vector.load %arg3[%c0_3, %c0_4] : memref<1x256xf32, #tpu.memory_space<vmem>>, vector<1x256xf32>
    %6 = vector.shape_cast %5 : vector<1x256xf32> to vector<256xf32>
    %7 = vector.shape_cast %6 : vector<256xf32> to vector<1x256xf32>
    %8 = vector.broadcast %7 : vector<1x256xf32> to vector<64x256xf32>
    %9 = arith.addf %4, %8 : vector<64x256xf32>
    %10 = vector.extract_strided_slice %9 {offsets = [0, 0], sizes = [64, 128], strides = [1, 1]} : vector<64x256xf32> to vector<64x128xf32>
    %11 = vector.extract_strided_slice %9 {offsets = [0, 128], sizes = [64, 128], strides = [1, 1]} : vector<64x256xf32> to vector<64x128xf32>
    %12 = arith.negf %11 : vector<64x128xf32>
    %13 = math.exp %12 : vector<64x128xf32>
    %cst_5 = arith.constant 1.000000e+00 : f32
    %14 = vector.broadcast %cst_5 : f32 to vector<64x128xf32>
    %15 = arith.addf %14, %13 : vector<64x128xf32>
    %16 = arith.divf %14, %15 : vector<64x128xf32>
    %17 = vector.shape_cast %10 : vector<64x128xf32> to vector<1x16x512xf32>
    %18 = vector.extract_strided_slice %17 {offsets = [0, 0, 32], sizes = [1, 16, 32], strides = [1, 1, 1]} : vector<1x16x512xf32> to vector<1x16x32xf32>
    %19 = vector.extract_strided_slice %17 {offsets = [0, 0, 448], sizes = [1, 16, 32], strides = [1, 1, 1]} : vector<1x16x512xf32> to vector<1x16x32xf32>
    %c0_6 = arith.constant 0 : index
    %c1 = arith.constant 1 : index
    %c128 = arith.constant 128 : index
    %20 = vector.load %arg9[%c0_6, %c1, %c128] : memref<1x18x768xf32, #tpu.memory_space<vmem>>, vector<1x16x512xf32>
    tpu.vector_store %arg9[%c0_6, %c1, %c128], %17 {strides = array<i32>} : memref<1x18x768xf32, #tpu.memory_space<vmem>>, vector<1x16x512xf32>,
    %c0_7 = arith.constant 0 : index
    %c1_8 = arith.constant 1 : index
    %c96 = arith.constant 96 : index
    %21 = vector.load %arg9[%c0_7, %c1_8, %c96] : memref<1x18x768xf32, #tpu.memory_space<vmem>>, vector<1x16x32xf32>
    tpu.vector_store %arg9[%c0_7, %c1_8, %c96], %18 {strides = array<i32>} : memref<1x18x768xf32, #tpu.memory_space<vmem>>, vector<1x16x32xf32>,
    %c0_9 = arith.constant 0 : index
    %c1_10 = arith.constant 1 : index
    %c640 = arith.constant 640 : index
    %22 = vector.load %arg9[%c0_9, %c1_10, %c640] : memref<1x18x768xf32, #tpu.memory_space<vmem>>, vector<1x16x32xf32>
    tpu.vector_store %arg9[%c0_9, %c1_10, %c640], %19 {strides = array<i32>} : memref<1x18x768xf32, #tpu.memory_space<vmem>>, vector<1x16x32xf32>,
    %23 = vector.extract_strided_slice %17 {offsets = [0, 1, 0], sizes = [1, 1, 512], strides = [1, 1, 1]} : vector<1x16x512xf32> to vector<1x1x512xf32>
    %c0_11 = arith.constant 0 : index
    %c0_12 = arith.constant 0 : index
    %c128_13 = arith.constant 128 : index
    %24 = vector.load %arg9[%c0_11, %c0_12, %c128_13] : memref<1x18x768xf32, #tpu.memory_space<vmem>>, vector<1x1x512xf32>
    tpu.vector_store %arg9[%c0_11, %c0_12, %c128_13], %23 {strides = array<i32>} : memref<1x18x768xf32, #tpu.memory_space<vmem>>, vector<1x1x512xf32>,
    %25 = vector.extract_strided_slice %18 {offsets = [0, 1, 0], sizes = [1, 1, 32], strides = [1, 1, 1]} : vector<1x16x32xf32> to vector<1x1x32xf32>
    %c0_14 = arith.constant 0 : index
    %c0_15 = arith.constant 0 : index
    %c96_16 = arith.constant 96 : index
    %26 = vector.load %arg9[%c0_14, %c0_15, %c96_16] : memref<1x18x768xf32, #tpu.memory_space<vmem>>, vector<1x1x32xf32>
    tpu.vector_store %arg9[%c0_14, %c0_15, %c96_16], %25 {strides = array<i32>} : memref<1x18x768xf32, #tpu.memory_space<vmem>>, vector<1x1x32xf32>,
    %27 = vector.extract_strided_slice %19 {offsets = [0, 1, 0], sizes = [1, 1, 32], strides = [1, 1, 1]} : vector<1x16x32xf32> to vector<1x1x32xf32>
    %c0_17 = arith.constant 0 : index
    %c0_18 = arith.constant 0 : index
    %c640_19 = arith.constant 640 : index
    %28 = vector.load %arg9[%c0_17, %c0_18, %c640_19] : memref<1x18x768xf32, #tpu.memory_space<vmem>>, vector<1x1x32xf32>
    tpu.vector_store %arg9[%c0_17, %c0_18, %c640_19], %27 {strides = array<i32>} : memref<1x18x768xf32, #tpu.memory_space<vmem>>, vector<1x1x32xf32>,
    %29 = vector.extract_strided_slice %17 {offsets = [0, 14, 0], sizes = [1, 1, 512], strides = [1, 1, 1]} : vector<1x16x512xf32> to vector<1x1x512xf32>
    %c0_20 = arith.constant 0 : index
    %c17 = arith.constant 17 : index
    %c128_21 = arith.constant 128 : index
    %30 = vector.load %arg9[%c0_20, %c17, %c128_21] : memref<1x18x768xf32, #tpu.memory_space<vmem>>, vector<1x1x512xf32>
    tpu.vector_store %arg9[%c0_20, %c17, %c128_21], %29 {strides = array<i32>} : memref<1x18x768xf32, #tpu.memory_space<vmem>>, vector<1x1x512xf32>,
    %31 = vector.extract_strided_slice %18 {offsets = [0, 14, 0], sizes = [1, 1, 32], strides = [1, 1, 1]} : vector<1x16x32xf32> to vector<1x1x32xf32>
    %c0_22 = arith.constant 0 : index
    %c17_23 = arith.constant 17 : index
    %c96_24 = arith.constant 96 : index
    %32 = vector.load %arg9[%c0_22, %c17_23, %c96_24] : memref<1x18x768xf32, #tpu.memory_space<vmem>>, vector<1x1x32xf32>
    tpu.vector_store %arg9[%c0_22, %c17_23, %c96_24], %31 {strides = array<i32>} : memref<1x18x768xf32, #tpu.memory_space<vmem>>, vector<1x1x32xf32>,
    %33 = vector.extract_strided_slice %19 {offsets = [0, 14, 0], sizes = [1, 1, 32], strides = [1, 1, 1]} : vector<1x16x32xf32> to vector<1x1x32xf32>
    %c0_25 = arith.constant 0 : index
    %c17_26 = arith.constant 17 : index
    %c640_27 = arith.constant 640 : index
    %34 = vector.load %arg9[%c0_25, %c17_26, %c640_27] : memref<1x18x768xf32, #tpu.memory_space<vmem>>, vector<1x1x32xf32>
    tpu.vector_store %arg9[%c0_25, %c17_26, %c640_27], %33 {strides = array<i32>} : memref<1x18x768xf32, #tpu.memory_space<vmem>>, vector<1x1x32xf32>,
    %c0_28 = arith.constant 0 : index
    %c0_29 = arith.constant 0 : index
    %35 = vector.load %arg4[%c0_28, %c0_29] : memref<9x512xf32, #tpu.memory_space<vmem>>, vector<9x512xf32>
    %cst_30 = arith.constant 0.000000e+00 : f32
    %36 = vector.broadcast %cst_30 : f32 to vector<1x16x512xf32>
    %c0_31 = arith.constant 0 : index
    %c0_32 = arith.constant 0 : index
    %c96_33 = arith.constant 96 : index
    %37 = vector.load %arg9[%c0_31, %c0_32, %c96_33] : memref<1x18x768xf32, #tpu.memory_space<vmem>>, vector<1x16x512xf32>
    %38 = vector.extract_strided_slice %35 {offsets = [0, 0], sizes = [1, 512], strides = [1, 1]} : vector<9x512xf32> to vector<1x512xf32>
    %39 = vector.shape_cast %38 : vector<1x512xf32> to vector<512xf32>
    %40 = vector.shape_cast %39 : vector<512xf32> to vector<1x1x512xf32>
    %41 = vector.broadcast %40 : vector<1x1x512xf32> to vector<1x16x512xf32>
    %42 = arith.mulf %37, %41 : vector<1x16x512xf32>
    %43 = arith.addf %36, %42 : vector<1x16x512xf32>
    %c0_34 = arith.constant 0 : index
    %c0_35 = arith.constant 0 : index
    %c128_36 = arith.constant 128 : index
    %44 = vector.load %arg9[%c0_34, %c0_35, %c128_36] : memref<1x18x768xf32, #tpu.memory_space<vmem>>, vector<1x16x512xf32>
    %45 = vector.extract_strided_slice %35 {offsets = [1, 0], sizes = [1, 512], strides = [1, 1]} : vector<9x512xf32> to vector<1x512xf32>
    %46 = vector.shape_cast %45 : vector<1x512xf32> to vector<512xf32>
    %47 = vector.shape_cast %46 : vector<512xf32> to vector<1x1x512xf32>
    %48 = vector.broadcast %47 : vector<1x1x512xf32> to vector<1x16x512xf32>
    %49 = arith.mulf %44, %48 : vector<1x16x512xf32>
    %50 = arith.addf %43, %49 : vector<1x16x512xf32>
    %c0_37 = arith.constant 0 : index
    %c0_38 = arith.constant 0 : index
    %c160 = arith.constant 160 : index
    %51 = vector.load %arg9[%c0_37, %c0_38, %c160] : memref<1x18x768xf32, #tpu.memory_space<vmem>>, vector<1x16x512xf32>
    %52 = vector.extract_strided_slice %35 {offsets = [2, 0], sizes = [1, 512], strides = [1, 1]} : vector<9x512xf32> to vector<1x512xf32>
    %53 = vector.shape_cast %52 : vector<1x512xf32> to vector<512xf32>
    %54 = vector.shape_cast %53 : vector<512xf32> to vector<1x1x512xf32>
    %55 = vector.broadcast %54 : vector<1x1x512xf32> to vector<1x16x512xf32>
    %56 = arith.mulf %51, %55 : vector<1x16x512xf32>
    %57 = arith.addf %50, %56 : vector<1x16x512xf32>
    %c0_39 = arith.constant 0 : index
    %c1_40 = arith.constant 1 : index
    %c96_41 = arith.constant 96 : index
    %58 = vector.load %arg9[%c0_39, %c1_40, %c96_41] : memref<1x18x768xf32, #tpu.memory_space<vmem>>, vector<1x16x512xf32>
    %59 = vector.extract_strided_slice %35 {offsets = [3, 0], sizes = [1, 512], strides = [1, 1]} : vector<9x512xf32> to vector<1x512xf32>
    %60 = vector.shape_cast %59 : vector<1x512xf32> to vector<512xf32>
    %61 = vector.shape_cast %60 : vector<512xf32> to vector<1x1x512xf32>
    %62 = vector.broadcast %61 : vector<1x1x512xf32> to vector<1x16x512xf32>
    %63 = arith.mulf %58, %62 : vector<1x16x512xf32>
    %64 = arith.addf %57, %63 : vector<1x16x512xf32>
    %c0_42 = arith.constant 0 : index
    %c1_43 = arith.constant 1 : index
    %c128_44 = arith.constant 128 : index
    %65 = vector.load %arg9[%c0_42, %c1_43, %c128_44] : memref<1x18x768xf32, #tpu.memory_space<vmem>>, vector<1x16x512xf32>
    %66 = vector.extract_strided_slice %35 {offsets = [4, 0], sizes = [1, 512], strides = [1, 1]} : vector<9x512xf32> to vector<1x512xf32>
    %67 = vector.shape_cast %66 : vector<1x512xf32> to vector<512xf32>
    %68 = vector.shape_cast %67 : vector<512xf32> to vector<1x1x512xf32>
    %69 = vector.broadcast %68 : vector<1x1x512xf32> to vector<1x16x512xf32>
    %70 = arith.mulf %65, %69 : vector<1x16x512xf32>
    %71 = arith.addf %64, %70 : vector<1x16x512xf32>
    %c0_45 = arith.constant 0 : index
    %c1_46 = arith.constant 1 : index
    %c160_47 = arith.constant 160 : index
    %72 = vector.load %arg9[%c0_45, %c1_46, %c160_47] : memref<1x18x768xf32, #tpu.memory_space<vmem>>, vector<1x16x512xf32>
    %73 = vector.extract_strided_slice %35 {offsets = [5, 0], sizes = [1, 512], strides = [1, 1]} : vector<9x512xf32> to vector<1x512xf32>
    %74 = vector.shape_cast %73 : vector<1x512xf32> to vector<512xf32>
    %75 = vector.shape_cast %74 : vector<512xf32> to vector<1x1x512xf32>
    %76 = vector.broadcast %75 : vector<1x1x512xf32> to vector<1x16x512xf32>
    %77 = arith.mulf %72, %76 : vector<1x16x512xf32>
    %78 = arith.addf %71, %77 : vector<1x16x512xf32>
    %c0_48 = arith.constant 0 : index
    %c2 = arith.constant 2 : index
    %c96_49 = arith.constant 96 : index
    %79 = vector.load %arg9[%c0_48, %c2, %c96_49] : memref<1x18x768xf32, #tpu.memory_space<vmem>>, vector<1x16x512xf32>
    %80 = vector.extract_strided_slice %35 {offsets = [6, 0], sizes = [1, 512], strides = [1, 1]} : vector<9x512xf32> to vector<1x512xf32>
    %81 = vector.shape_cast %80 : vector<1x512xf32> to vector<512xf32>
    %82 = vector.shape_cast %81 : vector<512xf32> to vector<1x1x512xf32>
    %83 = vector.broadcast %82 : vector<1x1x512xf32> to vector<1x16x512xf32>
    %84 = arith.mulf %79, %83 : vector<1x16x512xf32>
    %85 = arith.addf %78, %84 : vector<1x16x512xf32>
    %c0_50 = arith.constant 0 : index
    %c2_51 = arith.constant 2 : index
    %c128_52 = arith.constant 128 : index
    %86 = vector.load %arg9[%c0_50, %c2_51, %c128_52] : memref<1x18x768xf32, #tpu.memory_space<vmem>>, vector<1x16x512xf32>
    %87 = vector.extract_strided_slice %35 {offsets = [7, 0], sizes = [1, 512], strides = [1, 1]} : vector<9x512xf32> to vector<1x512xf32>
    %88 = vector.shape_cast %87 : vector<1x512xf32> to vector<512xf32>
    %89 = vector.shape_cast %88 : vector<512xf32> to vector<1x1x512xf32>
    %90 = vector.broadcast %89 : vector<1x1x512xf32> to vector<1x16x512xf32>
    %91 = arith.mulf %86, %90 : vector<1x16x512xf32>
    %92 = arith.addf %85, %91 : vector<1x16x512xf32>
    %c0_53 = arith.constant 0 : index
    %c2_54 = arith.constant 2 : index
    %c160_55 = arith.constant 160 : index
    %93 = vector.load %arg9[%c0_53, %c2_54, %c160_55] : memref<1x18x768xf32, #tpu.memory_space<vmem>>, vector<1x16x512xf32>
    %94 = vector.extract_strided_slice %35 {offsets = [8, 0], sizes = [1, 512], strides = [1, 1]} : vector<9x512xf32> to vector<1x512xf32>
    %95 = vector.shape_cast %94 : vector<1x512xf32> to vector<512xf32>
    %96 = vector.shape_cast %95 : vector<512xf32> to vector<1x1x512xf32>
    %97 = vector.broadcast %96 : vector<1x1x512xf32> to vector<1x16x512xf32>
    %98 = arith.mulf %93, %97 : vector<1x16x512xf32>
    %99 = arith.addf %92, %98 : vector<1x16x512xf32>
    %c0_56 = arith.constant 0 : index
    %c0_57 = arith.constant 0 : index
    %100 = vector.load %arg5[%c0_56, %c0_57] : memref<1x512xf32, #tpu.memory_space<vmem>>, vector<1x512xf32>
    %101 = vector.shape_cast %100 : vector<1x512xf32> to vector<512xf32>
    %102 = vector.shape_cast %101 : vector<512xf32> to vector<1x1x512xf32>
    %103 = vector.broadcast %102 : vector<1x1x512xf32> to vector<1x16x512xf32>
    %104 = arith.addf %99, %103 : vector<1x16x512xf32>
    %105 = vector.shape_cast %104 : vector<1x16x512xf32> to vector<64x128xf32>
    %106 = arith.mulf %105, %16 : vector<64x128xf32>
    %107 = arith.truncf %106 : vector<64x128xf32> to vector<64x128xbf16>
    %c0_58 = arith.constant 0 : index
    %c0_59 = arith.constant 0 : index
    %108 = vector.load %arg6[%c0_58, %c0_59] : memref<128x128xbf16, #tpu.memory_space<vmem>>, vector<128x128xbf16>
    %cst_60 = arith.constant dense<0.000000e+00> : vector<64x128xf32>
    %109 = tpu.matmul %107, %108, %cst_60 {dimension_numbers = #tpu.dot_dimension_numbers<[1], [0], [0], [1], [0, 0, 1, 1], [], []>} : vector<64x128xbf16>, vector<128x128xbf16>, vector<64x128xf32> -> vector<64x128xf32>
    %c0_61 = arith.constant 0 : index
    %c0_62 = arith.constant 0 : index
    %110 = vector.load %arg7[%c0_61, %c0_62] : memref<1x128xf32, #tpu.memory_space<vmem>>, vector<1x128xf32>
    %111 = vector.shape_cast %110 : vector<1x128xf32> to vector<128xf32>
    %112 = vector.shape_cast %111 : vector<128xf32> to vector<1x128xf32>
    %113 = vector.broadcast %112 : vector<1x128xf32> to vector<64x128xf32>
    %114 = arith.addf %109, %113 : vector<64x128xf32>
    %115 = vector.shape_cast %114 : vector<64x128xf32> to vector<16x512xf32>
    %c0_63 = arith.constant 0 : index
    %c0_64 = arith.constant 0 : index
    %116 = vector.load %arg8[%c0_63, %c0_64] : memref<16x512xf32, #tpu.memory_space<vmem>>, vector<16x512xf32>
    tpu.vector_store %arg8[%c0_63, %c0_64], %115 {strides = array<i32>} : memref<16x512xf32, #tpu.memory_space<vmem>>, vector<16x512xf32>,
    return
  }
  func.func @transform_0(%arg0: i32) -> (i32, i32) {
    %c0_i32 = arith.constant 0 : i32
    %c0_i32_0 = arith.constant 0 : i32
    return %arg0, %c0_i32 : i32, i32
  }
  func.func @transform_1(%arg0: i32) -> (i32, i32) {
    %c0_i32 = arith.constant 0 : i32
    %c0_i32_0 = arith.constant 0 : i32
    %c0_i32_1 = arith.constant 0 : i32
    return %c0_i32, %c0_i32_0 : i32, i32
  }
  func.func @transform_2(%arg0: i32) -> (i32, i32) {
    %c0_i32 = arith.constant 0 : i32
    %c0_i32_0 = arith.constant 0 : i32
    %c0_i32_1 = arith.constant 0 : i32
    return %c0_i32, %c0_i32_0 : i32, i32
  }
  func.func @transform_3(%arg0: i32) -> (i32, i32) {
    %c0_i32 = arith.constant 0 : i32
    %c0_i32_0 = arith.constant 0 : i32
    %c0_i32_1 = arith.constant 0 : i32
    return %c0_i32, %c0_i32_0 : i32, i32
  }
  func.func @transform_4(%arg0: i32) -> (i32, i32) {
    %c0_i32 = arith.constant 0 : i32
    %c0_i32_0 = arith.constant 0 : i32
    %c0_i32_1 = arith.constant 0 : i32
    return %c0_i32, %c0_i32_0 : i32, i32
  }
  func.func @transform_5(%arg0: i32) -> (i32, i32) {
    %c0_i32 = arith.constant 0 : i32
    %c0_i32_0 = arith.constant 0 : i32
    %c0_i32_1 = arith.constant 0 : i32
    return %c0_i32, %c0_i32_0 : i32, i32
  }
  func.func @transform_6(%arg0: i32) -> (i32, i32) {
    %c0_i32 = arith.constant 0 : i32
    %c0_i32_0 = arith.constant 0 : i32
    %c0_i32_1 = arith.constant 0 : i32
    return %c0_i32, %c0_i32_0 : i32, i32
  }
  func.func @transform_7(%arg0: i32) -> (i32, i32) {
    %c0_i32 = arith.constant 0 : i32
    %c0_i32_0 = arith.constant 0 : i32
    return %arg0, %c0_i32 : i32, i32
  }
}

</mosaic_0001>

<bundles_post_ra>
// kernel: tpu_custom_call.1
= control target key start
LH: loop header
LB: loop body
LE: loop exit
PB: predicated region body
PF: predicated region fallthrough
CT: control target
= control target key end

     0   :  { %s4669_s0 = inlined_call_operand.hbm [shape: f32[32,512], index: 0, kind: input, shape index: {}]   ;;  %s4670_s1 = inlined_call_operand.hbm [shape: bf16[128,256], index: 1, kind: input, shape index: {}]   ;;  %s4671_s2 = inlined_call_operand.vmem [shape: f32[1,256], index: 2, kind: input, shape index: {}]   ;;  %s4672_s3 = inlined_call_operand.hbm [shape: f32[9,512], index: 3, kind: input, shape index: {}]   ;;  %s4673_s4 = inlined_call_operand.vmem [shape: f32[1,512], index: 4, kind: input, shape index: {}]   ;;  %s4674_s5 = inlined_call_operand.hbm [shape: bf16[128,128], index: 5, kind: input, shape index: {}]   ;;  %s4675_s6 = inlined_call_operand.vmem [shape: f32[1,128], index: 6, kind: input, shape index: {}]   ;;  %s4676_s7 = inlined_call_operand.hbm [shape: f32[32,512], index: 7, kind: output, shape index: {}]  }
   0x1   :  { %4739 = sst [smem:[#allocation63_spill]] %s4670_s1 }
   0x2   :  { %12 = vsyncpa [#allocation4], 0 }
   0x3   :  { %14 = vsyncpa [#allocation4 + $0x1], 0 }
   0x4   :  { %15 = vsyncpa [#allocation7], 0 }
   0x5   :  { %16 = vsyncpa [#allocation10], 0 }
   0x6   :  { %17 = vsyncpa [#allocation5], 0 }
   0x7   :  { %19 = vsyncpa [#allocation5 + $0x1], 0  ;;  %s3189_s24 = smov 0   ;;  %s3191_s25 = smov 0  }
   0x8   :  { %s3193_s26 = smov 0   ;;  %s3195_s27 = smov 0  }
   0x9 LB: > { %s3210_s28 = sadd.s32 4294967295, %s3128_s27   ;;  %s2683_s29 = sadd.s32 4294967294, %s3128_s27   ;;  %s3128_s27 = sphi %s3195_s27, %s4894_s27   ;;  %s3124_s26 = sphi %s3193_s26, %s4893_s26   ;;  %s3120_s25 = sphi %s3191_s25, %s4892_s25   ;;  %s3116_s24 = sphi %s3189_s24, %s4891_s24  }
   0xa   : > { %p45_p0 = scmp.ne.s32.totalorder %s3120_s25, %s3116_s24  ;;  %p4677_p1 = scmp.eq.s32.totalorder %s3210_s28, 0 }
   0xb   : > { %p201_p3 = scmp.eq.s32.totalorder %s2683_s29, 1  ;;  %p2684_p5 = scmp.ge.s32.totalorder %s3128_s27, 1 }
   0xc   : > { %p3219_p4 = por %p4677_p1, %p45_p0  ;;  %p208_p7 = scmp.lt.s32.totalorder %s3128_s27, 3 }
   0xd   : > { %p3224_p6 = por %p201_p3, %p45_p0  ;;  %s3130_s10 = smov [#allocation6]  }
   0xe   : > { %s4740_s30 = scalar_select %p3219_p4, 1, 0 }
   0xf   : > { %s4741_s8 = scalar_select %p3224_p6, 1, 0 }
  0x10   : > { %p3229_p8 = pnand %p2684_p5, %p208_p7  ;;  %s220_s11 = sshll.u32 %s3130_s10, 4  ;;  %s221_s11 = int_to_ptr.vmem [resolvable:$true] %s220_s11 }
  0x11   : > { %s3131_s13 = smov [#allocation8]   ;;  %s2961_s15 = scalar_lea.vmem %s221_s11, 2048 }
  0x12   : > { %s4742_s9 = scalar_select %p3229_p8, 1, 0 }
  0x13   : > { %p2798_p9 = pneg %p3229_p8  ;;  %s236_s14 = sshll.u32 %s3131_s13, 4  ;;  %s237_s14 = int_to_ptr.vmem [resolvable:$true] %s236_s14 }
  0x14   : > { %p2962_p13 = scmp.ne.s32.totalorder %s221_s11, %s2961_s15  ;;  %p2969_p5 = scmp.lt.s32.totalorder %s221_s11, %s221_s11 }
  0x15   : > { %p3238_p11 = pnand %p2798_p9, %p4677_p1  ;;  %p2970_p7 = scmp.lt.s32.totalorder %s2961_s15, %s2961_s15 }
  0x17   : > { %p2952_p12 = pneg %p3238_p11  ;;  %p2971_p10 = por %p2970_p7, %p2969_p5 }
  0x19   : > { %p2964_p0 = pnand %p2962_p13, %p2952_p12 }
  0x1b   : > { %p2965_p3 = pneg %p2964_p0 }
  0x1d   : > { %p2972_p9 = pnand %p2971_p10, %p2965_p3 }
  0x1f   : > { %2975 = shalt.err (!%p2972_p9)
}
  0x20   : > { %s3132_s16 = smov 128   ;;  %s3133_s17 = smov 8  }
  0x21   : > { %s4744_s1 = sld [smem:[#allocation63_spill]]  ;;  %s2987_s20 = scalar_lea.vmem %s237_s14, 1024 }
  0x22   : > { %p2988_p1 = scmp.ne.s32.totalorder %s237_s14, %s2987_s20  ;;  %p2995_p2 = scmp.lt.s32.totalorder %s237_s14, %s237_s14 }
  0x23   : > { %p2996_p6 = scmp.lt.s32.totalorder %s2987_s20, %s2987_s20 }
  0x24   : > { %p2990_p13 = pnand %p2988_p1, %p2952_p12 }
  0x25   : > { %p2997_p5 = por %p2996_p6, %p2995_p2 }
  0x26   : > { %p2991_p0 = pneg %p2990_p13 }
  0x27   : > { %2801 = dma.hbm_to_vmem [thread:$0]  (!%p3238_p11), %s4744_s1, 2048, %s221_s11, [#allocation7], %s3132_s16, %s3132_s16, %s3133_s17  }
  0x28   : > { %p2998_p10 = pnand %p2997_p5, %p2991_p0 }
  0x2a   : > { %3001 = shalt.err (!%p2998_p10)
}
  0x2b   : > { %s4678_s21 = smov 512   ;;  %s4679_s22 = smov 32  }
  0x2c   : > { %2804 = dma.hbm_to_vmem [thread:$0]  (!%p3238_p11), %s4672_s3, 1024, %s237_s14, [#allocation7], %s4678_s21, %s4678_s21, %s4679_s22  }
  0x2d   : > { %s3136_s10 = smov [#allocation9]  }
  0x2e   : > { %s252_s11 = sshll.u32 %s3136_s10, 4  ;;  %s253_s11 = int_to_ptr.vmem [resolvable:$true] %s252_s11 }
  0x2f   : > { %s3013_s13 = scalar_lea.vmem %s253_s11, 1024  ;;  %p3021_p3 = scmp.lt.s32.totalorder %s253_s11, %s253_s11 }
  0x30   : > { %p3014_p1 = scmp.ne.s32.totalorder %s253_s11, %s3013_s13  ;;  %p3022_p7 = scmp.lt.s32.totalorder %s3013_s13, %s3013_s13 }
  0x32   : > { %p3016_p2 = pnand %p3014_p1, %p2952_p12  ;;  %p3023_p9 = por %p3022_p7, %p3021_p3 }
  0x34   : > { %p3017_p6 = pneg %p3016_p2 }
  0x36   : > { %p3024_p13 = pnand %p3023_p9, %p3017_p6 }
  0x38   : > { %3027 = shalt.err (!%p3024_p13)
}
  0x39   : > { %s3137_s15 = smov 64   ;;  %s3138_s14 = smov 4  }
  0x3a   : > { %2807 = dma.hbm_to_vmem [thread:$0]  (!%p3238_p11), %s4674_s5, 1024, %s253_s11, [#allocation10], %s3137_s15, %s3137_s15, %s3138_s14  }
  0x3b   : > { %s3272_s18 = sadd.s32 1, %s3128_s27   ;;  %s32_s20 = sadd.s32 1, %s3124_s26 }
  0x3c   : > { %s29_s19 = ssub.s32 %s3128_s27, %s3272_s18  ;;  %p39_p0 = scmp.ne.s32.totalorder %s3124_s26, %s3120_s25 }
  0x3d   : > { %p30_p12 = scmp.eq.s32.totalorder %s29_s19, 0  ;;  %p40_p5 = scmp.eq.s32.totalorder %s3128_s27, 0 }
  0x3e   : > { %p2819_p10 = scmp.lt.s32.totalorder %s3128_s27, 2  ;;  %p4745_p2 = scmp.eq.s32.totalorder %s3210_s28, 1 }
  0x3f   : > { %s3282_s23 = scalar_select %p30_p12, %s3124_s26, %s32_s20  }
  0x40   : > { %p41_p1 = por %p40_p5, %p39_p0  ;;  %p3286_p6 = por %p4745_p2, %p39_p0 }
  0x41   : > { %s269_s12 = sand.u32 1, %s3124_s26   ;;  %s2743_s10 = sshll.u32 %s3128_s27, 10 }
  0x42   : > { %s4746_s29 = scalar_select %p3286_p6, 1, 0 }
  0x43   : > { %s2689_s11 = sshll.u32 %s269_s12, 6  ;;  %s3295_s14 = scalar_lea.hbm %s4669_s0, %s2743_s10 }
  0x44   : > { %s273_s16 = scalar_lea.vmem [#allocation3], %s2689_s11  ;;  %p3297_p11 = pnand %p2819_p10, %p41_p1 }
  0x45   : > { %s281_s17 = sshll.u32 %s273_s16, 4  ;;  %s3303_s20 = scalar_lea.sflag [#allocation4], %s269_s12  ;;  %s3301_s17 = int_to_ptr.vmem [resolvable:$true] %s281_s17 }
  0x46   : > { %s3028_s21 = scalar_lea.hbm %s3295_s14, 1024  ;;  %p3030_p7 = pneg %p3297_p11 }
  0x47   : > { %p3029_p3 = scmp.ne.s32.totalorder %s3295_s14, %s3028_s21  ;;  %s3033_s11 = scalar_lea.hbm %s4669_s0, 2048 }
  0x48   : > { %p3034_p12 = scmp.lt.s32.totalorder %s3295_s14, %s4669_s0  ;;  %p3035_p0 = scmp.lt.s32.totalorder %s3033_s11, %s3028_s21 }
  0x49   : > { %p3031_p9 = pnand %p3030_p7, %p3029_p3 }
  0x4a   : > { %p3036_p5 = por %p3035_p0, %p3034_p12 }
  0x4b   : > { %p3032_p13 = pneg %p3031_p9 }
  0x4d   : > { %p3037_p10 = pnand %p3036_p5, %p3032_p13 }
  0x4f   : > { %3040 = shalt.err (!%p3037_p10)
}
  0x50   : > { %s3041_s12 = scalar_lea.vmem %s3301_s17, 1024  ;;  %s3139_s22 = smov [#allocation3]  }
  0x51   : > { %p3042_p1 = scmp.ne.s32.totalorder %s3301_s17, %s3041_s12  ;;  %s3046_s1 = sshll.u32 %s3139_s22, 4  ;;  %s3047_s1 = int_to_ptr.vmem [resolvable:$false] %s3046_s1 }
  0x52   : > { %s3048_s10 = scalar_lea.vmem %s3047_s1, 2048  ;;  %p3049_p9 = scmp.lt.s32.totalorder %s3301_s17, %s3047_s1 }
  0x53   : > { %p3044_p2 = pnand %p3042_p1, %p3030_p7  ;;  %p3050_p6 = scmp.lt.s32.totalorder %s3048_s10, %s3041_s12 }
  0x55   : > { %p3045_p3 = pneg %p3044_p2  ;;  %p3051_p4 = por %p3050_p6, %p3049_p9 }
  0x57   : > { %p3052_p8 = pnand %p3051_p4, %p3045_p3 }
  0x59   : > { %3055 = shalt.err (!%p3052_p8)
}
  0x5a   : > { %s4748_s21 = smov 32   ;;  %s4749_s13 = smov 512  }
  0x5b   : > { %2811 = dma.hbm_to_vmem [thread:$0]  (!%p3297_p11), %s3295_s14, 1024, %s3301_s17, %s3303_s20, %s4749_s13, %s4749_s13, %s4748_s21  }
  0x5c   : > { %p4750_p7 = scmp.ne.s32.totalorder %s4742_s9, 0 }
  0x5e   : > { %293 = sbr.rel (%p4750_p7) target bundleno = 1031 (0x407), region = 48 }
  0x63   : > { %s3330_s22 = sand.u32 1, %s3120_s25   ;;  %p4751_p4 = scmp.ne.s32.totalorder %s4740_s30, 0 }
  0x64   : > { %s2694_s1 = sshll.u32 %s3330_s22, 6  ;;  %s296_s11 = scalar_lea.sflag [#allocation4], %s3330_s22 }
  0x65   : > { %s3336_s19 = scalar_lea.vmem [#allocation3], %s2694_s1 }
  0x66   : > { %3099 = dma.done.wait (%p4751_p4), %s296_s11, 1024  }
  0x67   : > { %3101 = vsyncadd (%p4751_p4), %s296_s11, 4294966272  ;;  %p4752_p8 = scmp.eq.s32.totalorder %s3210_s28, 0 }
  0x69   : > { %3103 = dma.done.wait (%p4752_p8), [#allocation7], 3072   ;;  %p4753_p6 = pmov %p4752_p8 }
  0x6b   : > { %3105 = vsyncadd (%p4753_p6), [#allocation7], 4294964224  ;;  %p4754_p11 = pmov %p4753_p6 }
  0x6c   : > { %p4755_p13 = pmov %p4753_p6 }
  0x6d   : > { %3107 = dma.done.wait (%p4754_p11), [#allocation10], 1024  }
  0x6e   : > { %3109 = vsyncadd (%p4755_p13), [#allocation10], 4294966272  ;;  %v3140_v0 = vmov 0   ;;  %v2873_v1 = vld [vmem:[#allocation6 + $0x74] ss:$8 sps:$4 sm:$0xff]   ;;  %v368_v8 = vlaneseq  ;;  %v3362_v23 = vld [vmem:[#allocation8 + $0x8] sm:$0xff] }
  0x6f   : > { %641 = vmatprep.mubr.bf16.mxu0 %v3140_v0  ;;  %v2875_v2 = vld [vmem:[#allocation6 + $0x70] ss:$8 sps:$4 sm:$0xff]   ;;  %609 = vmatprep.subr.bf16.mxu0 %v2873_v1  ;;  %v2876_v3 = vld [vmem:[#allocation6 + $0x64] ss:$8 sps:$4 sm:$0xff]   ;;  %v2878_v4 = vld [vmem:[#allocation6 + $0x60] ss:$8 sps:$4 sm:$0xff]  }
  0x70   : > { %610 = vmatpush1.bf16.msra.mxu0 %v2875_v2  ;;  %v2879_v5 = vld [vmem:[#allocation6 + $0x54] ss:$8 sps:$4 sm:$0xff]   ;;  %v3141_v6 = vmov 1983009808   ;;  %v2881_v9 = vld [vmem:[#allocation6 + $0x50] ss:$8 sps:$4 sm:$0xff]  }
  0x71   : > { %611 = vmatprep.subr.bf16.mxu0 %v2876_v3  ;;  %v366_v7 = vunpack.c.l.s4 %v3141_v6  ;;  %v2882_v10 = vld [vmem:[#allocation6 + $0x44] ss:$8 sps:$4 sm:$0xff]   ;;  %v2884_v11 = vld [vmem:[#allocation6 + $0x40] ss:$8 sps:$4 sm:$0xff]   ;;  %v3352_v13 = vshrl.u32 %v368_v8, 7  ;;  %v3370_v31 = vld [vmem:[#allocation8 + $0x18] sm:$0xff] }
  0x72   : > { %v2885_v14 = vld [vmem:[#allocation6 + $0x34] ss:$8 sps:$4 sm:$0xff]   ;;  %v2897_v15 = vld [vmem:[%s3336_s19] ss:$8 sps:$4 sm:$0xff]   ;;  %v3142_v16 = vmov 1966171168  }
  0x73   : > { %v367_v12 = vunpack.c.0.s8 %v366_v7  ;;  %v442_v17 = vunpack.c.l.s4 %v3142_v16  ;;  %v2899_v18 = vld [vmem:[%s3336_s19 + $0x10] ss:$8 sps:$4 sm:$0xff]   ;;  %v3360_v20 = vsub.s32 2, %v3352_v13  ;;  %v2888_v22 = vld [vmem:[#allocation6 + $0x24] ss:$8 sps:$4 sm:$0xff]   ;;  %v1476_v33 = vsub.s32 5, %v3352_v13 }
  0x74   : > { %612 = vmatpush1.bf16.msra.mxu0 %v2878_v4  ;;  %v2887_v21 = vld [vmem:[#allocation6 + $0x30] ss:$8 sps:$4 sm:$0xff]   ;;  %v2890_v24 = vld [vmem:[#allocation6 + $0x20] ss:$8 sps:$4 sm:$0xff]   ;;  %v2891_v27 = vld [vmem:[#allocation6 + $0x14] ss:$8 sps:$4 sm:$0xff]  }
  0x75   : > { %613 = vmatprep.subr.bf16.mxu0 %v2879_v5  ;;  %v3357_v19 = vsub.s32 %v367_v12, %v3352_v13  ;;  %v443_v25 = vunpack.c.0.s8 %v442_v17  ;;  %v3364_v26 = vld [vmem:[#allocation8] sm:$0xff]  ;;  %v1150_v30 = vrot.slane %v3362_v23, %v3360_v20  ;;  %v3372_v32 = vld [vmem:[#allocation8 + $0x10] sm:$0xff]  ;;  %s3143_s30 = smov 32   ;;  %v1158_v41 = vrot.slane %v3370_v31, %v3360_v20  ;;  %v2724_v63 = vld [vmem:[#allocation8 + $0x28] ss:$0 sm:$0xff]  ;;  %s3144_s9 = smov 96  }
  0x76   : > { %v2893_v34 = vld [vmem:[#allocation6 + $0x10] ss:$8 sps:$4 sm:$0xff]   ;;  %v1146_v35 = vrot.slane %v3364_v26, %v3360_v20  ;;  %v2901_v39 = vld [vmem:[%s3336_s19 + $0x4] ss:$8 sps:$4 sm:$0xff]   ;;  %v2902_v40 = vld [vmem:[%s3336_s19 + $0x14] ss:$8 sps:$4 sm:$0xff]   ;;  %v1154_v42 = vrot.slane %v3372_v32, %v3360_v20  ;;  %v1481_v44 = vrot.slane %v3362_v23, %v1476_v33  ;;  %v1477_v50 = vrot.slane %v3364_v26, %v1476_v33 }
  0x77   : > { %4756 = vst [vmem:[#allocation16_spill] sm:$0xff] %v3357_v19  ;;  %v371_v28 = vrot.slane %v2897_v15, %v3357_v19  ;;  %v385_v29 = vrot.slane %v2899_v18, %v3357_v19  ;;  %1165 = vrot.lane.b32.xlu0 %v1150_v30, %s3143_s30  ;;  %v3379_v38 = vsub.s32 %v443_v25, %v3352_v13  ;;  %v2894_v43 = vld [vmem:[#allocation6 + $0x4] ss:$8 sps:$4 sm:$0xff]   ;;  %v2896_v49 = vld [vmem:[#allocation6] ss:$8 sps:$4 sm:$0xff]   ;;  %v3411_v1 = vsub.s32 0, %v3352_v13 }
  0x78   : > { %614 = vmatpush1.bf16.msra.mxu0 %v2881_v9  ;;  %1163 = vrot.lane.b32.xlu1 %v1146_v35, %s3143_s30  ;;  %v378_v47 = vrot.slane %v2901_v39, %v3357_v19  ;;  %v392_v48 = vrot.slane %v2902_v40, %v3357_v19  ;;  %v1489_v51 = vrot.slane %v3370_v31, %v1476_v33  ;;  %v2903_v55 = vld [vmem:[%s3336_s19 + $0x20] ss:$8 sps:$4 sm:$0xff]   ;;  %v2905_v56 = vld [vmem:[%s3336_s19 + $0x30] ss:$8 sps:$4 sm:$0xff]   ;;  %v2907_v6 = vld [vmem:[%s3336_s19 + $0x24] ss:$8 sps:$4 sm:$0xff]  }
  0x79   : > { %615 = vmatprep.subr.bf16.mxu0 %v2882_v10  ;;  %v393_v36 = vcombine.low %v371_v28, %v385_v29  ;;  %v394_v37 = vcombine.high %v371_v28, %v385_v29  ;;  %4757 = vst [vmem:[#allocation17_spill] sm:$0xff] %v3379_v38  ;;  %v1485_v57 = vrot.slane %v3372_v32, %v1476_v33  ;;  %v2723_v58 = vld [vmem:[#allocation8 + $0x20] ss:$0 sm:$0xff]  ;;  %v2725_v2 = vld [vmem:[#allocation8 + $0x30] ss:$0 sm:$0xff]  ;;  %v1260_v18 = vsub.s32 3, %v3352_v13 }
  0x7a   : > { %v395_v53 = vcombine.low %v378_v47, %v392_v48  ;;  %v396_v54 = vcombine.high %v378_v47, %v392_v48  ;;  %v407_v61 = vrot.slane %v2903_v55, %v3357_v19  ;;  %v421_v62 = vrot.slane %v2905_v56, %v3357_v19  ;;  %v2908_v7 = vld [vmem:[%s3336_s19 + $0x34] ss:$8 sps:$4 sm:$0xff]   ;;  %v2726_v9 = vld [vmem:[#allocation8 + $0x38] ss:$0 sm:$0xff]  ;;  %v1978_v40 = vld [vmem:[%s4673_s4] sm:$0xf] }
  0x7b   : > { %1169 = vrot.lane.b32.xlu0 %v1158_v41, %s3143_s30  ;;  %v447_v45 = vrot.slane %v393_v36, %v3379_v38  ;;  %v454_v46 = vrot.slane %v394_v37, %v3379_v38  ;;  %v1013_v10 = vrot.slane %v3364_v26, %v3411_v1  ;;  %v428_v15 = vrot.slane %v2908_v7, %v3357_v19  ;;  %s3146_s16 = smov 64   ;;  %s4600_s11 = scalar_lea.vmem [#allocation11], %s2694_s1 }
  0x7c   : > { %616 = vmatpush1.bf16.msra.mxu0 %v2884_v11  ;;  %1167 = vrot.lane.b32.xlu1 %v1154_v42, %s3143_s30  ;;  %v461_v59 = vrot.slane %v395_v53, %v3379_v38  ;;  %v468_v60 = vrot.slane %v396_v54, %v3379_v38  ;;  %v429_v4 = vcombine.low %v407_v61, %v421_v62  ;;  %vm1038_vm0 = vcmask 785408   ;;  %s2745_s1 = sshll.u32 %s3210_s28, 10  ;;  %s2581_s19 = sshll.u32 %s4600_s11, 4  ;;  %s4621_s19 = int_to_ptr.vmem [resolvable:$true] %s2581_s19 }
  0x7d   : > { %617 = vmatprep.subr.bf16.mxu0 %v2885_v14  ;;  %v497_v52 = vpack.c.bf16 %v454_v46, %v447_v45  ;;  %v430_v5 = vcombine.high %v407_v61, %v421_v62  ;;  %v414_v14 = vrot.slane %v2907_v6, %v3357_v19  ;;  %v1017_v16 = vrot.slane %v3362_v23, %v3411_v1  ;;  %s4619_s17 = scalar_lea.hbm %s4676_s7, %s2745_s1  ;;  %s2567_s28 = scalar_lea.sflag [#allocation5], %s3330_s22 }
  0x7e   : > { %v498_v3 = vpack.c.bf16 %v468_v60, %v461_v59  ;;  %v475_v11 = vrot.slane %v429_v4, %v3379_v38  ;;  %v1021_v17 = vrot.slane %v3372_v32, %v3411_v1  ;;  %v1025_v25 = vrot.slane %v3370_v31, %v3411_v1  ;;  %s3056_s20 = scalar_lea.vmem %s4621_s19, 1024  ;;  %p4888_p0 = scmp.ne.s32.totalorder %s4746_s29, 0 }
  0x7f   : > { %1496 = vrot.lane.b32.xlu0 %v1481_v44, %s3143_s30  ;;  %v482_v12 = vrot.slane %v430_v5, %v3379_v38  ;;  %v1265_v30 = vrot.slane %v3362_v23, %v1260_v18  ;;  %v1269_v33 = vrot.slane %v3372_v32, %v1260_v18  ;;  %v1273_v36 = vrot.slane %v3370_v31, %v1260_v18  ;;  %p3057_p12 = scmp.ne.s32.totalorder %s4621_s19, %s3056_s20  ;;  %s3147_s15 = smov [#allocation11]  }
  0x80   : > { %618 = vmatpush1.bf16.msra.mxu0 %v2887_v21  ;;  %1494 = vrot.lane.b32.xlu1 %v1477_v50, %s3143_s30  ;;  %v1983_v42 = vrot.slane %v1978_v40, %v3411_v1  ;;  %v3470_v44 = vsub.s32 1, %v3352_v13  ;;  %v1995_v46 = vrot.slane %v1978_v40, %v1260_v18  ;;  %vm3552_vm1 = vcmp.lt.s32.totalorder %v368_v8, 512 }
  0x81   : > { %619 = vmatprep.subr.bf16.mxu0 %v2888_v22  ;;  %v499_v21 = vpack.c.bf16 %v482_v12, %v475_v11  ;;  %v431_v22 = vcombine.low %v414_v14, %v428_v15  ;;  %v3145_v11 = vmov 1935823168   ;;  %vm866_vm2 = vcmask 1040384   ;;  %p3058_p5 = pnand %p3057_p12, %p4888_p0 }
  0x82   : > { %4758 = vst [vmem:[#allocation18_spill] sm:$0xff] %v3470_v44  ;;  %v1987_v45 = vrot.slane %v1978_v40, %v3470_v44  ;;  %v731_v12 = vunpack.c.l.s4 %v3145_v11  ;;  %vm929_vm3 = vcmask 261120   ;;  %vm1324_vm4 = vcmask 1046528  }
  0x83   : > { %1500 = vrot.lane.b32.xlu0 %v1489_v51, %s3143_s30  ;;  %v489_v28 = vrot.slane %v431_v22, %v3379_v38  ;;  %v3544_v22 = vsub.s32 7, %v3352_v13  ;;  %vm1689_vm5 = vcmask 1045504   ;;  %vm931_vm6 = vcmask 253952   ;;  %p3059_p10 = pneg %p3058_p5 }
  0x84   : > { %620 = vmatpush1.bf16.msra.mxu0 %v2890_v24  ;;  %1498 = vrot.lane.b32.xlu1 %v1485_v57, %s3143_s30  ;;  %v432_v24 = vcombine.high %v414_v14, %v428_v15  ;;  %v517_v14 = vld [vmem:[%s4671_s2] sm:$0x3]  ;;  %v732_v15 = vunpack.c.0.s8 %v731_v12  ;;  %vm916_vm7 = vcmask 1041152   ;;  %vm927_vm8 = vcmask 261121  }
  0x85   : > { %621 = vmatprep.subr.bf16.mxu0 %v2891_v27  ;;  %v1261_v27 = vrot.slane %v3364_v26, %v1260_v18  ;;  %vm912_vm9 = vcmask 1048321   ;;  %vm1219_vm10 = vcmask 523264   ;;  %vm914_vm11 = vcmask 1048320  }
  0x86   : > { %v496_v29 = vrot.slane %v432_v24, %v3379_v38 }
  0x87   : > { %1859 = vrot.lane.b32.xlu0 %v2723_v58, %s3143_s30 }
  0x88   : > { %622 = vmatpush1.bf16.msra.mxu0 %v2893_v34  ;;  %1861 = vrot.lane.b32.xlu1 %v2724_v63, %s3143_s30  ;;  %v3444_v34 = vsub.s32 6, %v3352_v13  ;;  %v500_v35 = vpack.c.bf16 %v496_v29, %v489_v28 }
  0x89   : > { %623 = vmatprep.subr.bf16.mxu0 %v2894_v43  ;;  %v1991_v43 = vrot.slane %v1978_v40, %v3360_v20 }
  0x8a   : > { %v1630_v37 = vrot.slane %v3362_v23, %v3444_v34  ;;  %v1634_v39 = vrot.slane %v3372_v32, %v3444_v34  ;;  %v1638_v41 = vrot.slane %v3370_v31, %v3444_v34 }
  0x8b   : > { %1863 = vrot.lane.b32.xlu0 %v2725_v2, %s3143_s30 }
  0x8c   : > { %624 = vmatpush1.bf16.msra.mxu0 %v2896_v49  ;;  %1865 = vrot.lane.b32.xlu1 %v2726_v9, %s3143_s30 }
  0x8f   : > { %642 = vmatmul.mubr.bf16.vlgmr.msra.gmra.mxu0 %v497_v52  ;;  %1030 = vrot.lane.b32.xlu0 %v1013_v10, %s3144_s9 }
  0x90   : > { %651 = vmatprep.mubr.bf16.mxu0 %v3140_v0  ;;  %1032 = vrot.lane.b32.xlu1 %v1017_v16, %s3144_s9  ;;  %v522_v16 = vrot.slane %v517_v14, %v3411_v1 }
  0x93   : > { %1034 = vrot.lane.b32.xlu0 %v1021_v17, %s3144_s9  ;;  %v3541_v17 = vsub.s32 %v732_v15, %v3352_v13 }
  0x94   : > { %1036 = vrot.lane.b32.xlu1 %v1025_v25, %s3144_s9 }
  0x95   : > { %4769 = vst [vmem:[#allocation29_spill] sm:$0xff] %v3541_v17 }
  0x97   : > { %652 = vmatmul.mubr.bf16.gmra.mxu0 %v498_v3  ;;  %1278 = vrot.lane.b32.xlu0 %v1261_v27, %s3144_s9 }
  0x98   : > { %661 = vmatprep.mubr.bf16.mxu0 %v3140_v0  ;;  %1280 = vrot.lane.b32.xlu1 %v1265_v30, %s3144_s9 }
  0x9b   : > { %1282 = vrot.lane.b32.xlu0 %v1269_v33, %s3144_s9 }
  0x9c   : > { %1284 = vrot.lane.b32.xlu1 %v1273_v36, %s3144_s9 }
  0x9f   : > { %662 = vmatmul.mubr.bf16.gmra.mxu0 %v499_v21 }
  0xa0   : > { %671 = vmatprep.mubr.bf16.mxu0 %v3140_v0  ;;  %v1626_v0 = vrot.slane %v3364_v26, %v3444_v34  ;;  %1645 = vrot.lane.b32.xlu1 %v1630_v37, %s3144_s9 }
  0xa2   : > { %1643 = vrot.lane.b32.xlu0 %v1626_v0, %s3144_s9 }
  0xa4   : > { %1649 = vrot.lane.b32.xlu1 %v1638_v41, %s3144_s9 }
  0xa6   : > { %1647 = vrot.lane.b32.xlu0 %v1634_v39, %s3144_s9 }
  0xa7   : > { %672 = vmatmul.mubr.bf16.gmra.mxu0 %v500_v35 }
  0xa8   : > { %1998 = vrot.lane.b32.xlu1 %v1987_v45, %s3144_s9 }
  0xaa   : > { %1996 = vrot.lane.b32.xlu0 %v1983_v42, %s3144_s9 }
  0xac   : > { %2002 = vrot.lane.b32.xlu1 %v1995_v46, %s3144_s9 }
  0xae   : > { %2000 = vrot.lane.b32.xlu0 %v1991_v43, %s3144_s9 }
  0xe9   : > { %v3475_v47 = vpop.permute.xlu0 %1165 }
  0xea   : > { %v3477_v48 = vpop.permute.xlu1 %1163 }
  0xed   : > { %v3479_v49 = vpop.permute.xlu0 %1169 }
  0xee   : > { %4759 = vst [vmem:[#allocation19_spill] sm:$0xff] %v3479_v49  ;;  %v3481_v50 = vpop.permute.xlu1 %1167 }
  0xf1   : > { %v3483_v20 = vpop.permute.xlu0 %1496 }
  0xf2   : > { %v3485_v51 = vpop.permute.xlu1 %1494 }
  0xf3   : > { %4760 = vst [vmem:[#allocation20_spill] sm:$0xff] %v3485_v51 }
  0xf5   : > { %v3487_v52 = vpop.permute.xlu0 %1500 }
  0xf6   : > { %4761 = vst [vmem:[#allocation21_spill] sm:$0xff] %v3487_v52  ;;  %v3489_v53 = vpop.permute.xlu1 %1498 }
  0xf9   : > { %v3491_v54 = vpop.permute.xlu0 %1859 }
  0xfa   : > { %4762 = vst [vmem:[#allocation22_spill] sm:$0xff] %v3491_v54  ;;  %v3493_v55 = vpop.permute.xlu1 %1861 }
  0xfd   : > { %v3495_v56 = vpop.permute.xlu0 %1863 }
  0xfe   : > { %v3497_v57 = vpop.permute.xlu1 %1865 }
  0xff   : > { %4763 = vst [vmem:[#allocation23_spill] sm:$0xff] %v3497_v57 }
 0x101   : > { %v3499_v58 = vpop.permute.xlu0 %1030 }
 0x102   : > { %4764 = vst [vmem:[#allocation24_spill] sm:$0xff] %v3499_v58  ;;  %v3501_v59 = vpop.permute.xlu1 %1032 }
 0x105   : > { %v3503_v60 = vpop.permute.xlu0 %1034 }
 0x106   : > { %v3508_v61 = vsel %vm1038_vm0, %v3501_v59, %v3503_v60  ;;  %v3510_v62 = vpop.permute.xlu1 %1036 }
 0x107   : > { %4765 = vst [vmem:[#allocation25_spill] sm:$0xff] %v3510_v62 }
 0x109   : > { %v3512_v63 = vpop.permute.xlu0 %1278 }
 0x10a   : > { %4766 = vst [vmem:[#allocation26_spill] sm:$0xff] %v3512_v63  ;;  %v3514_v2 = vpop.permute.xlu1 %1280 }
 0x10d   : > { %v3516_v3 = vpop.permute.xlu0 %1282 }
 0x10e   : > { %v3521_v4 = vsel %vm1038_vm0, %v3514_v2, %v3516_v3  ;;  %v3523_v5 = vpop.permute.xlu1 %1284 }
 0x10f   : > { %4767 = vst [vmem:[#allocation27_spill] sm:$0xff] %v3521_v4 }
 0x112   : > { %v3527_v7 = vpop.permute.xlu1 %1645 }
 0x114   : > { %v3525_v6 = vpop.permute.xlu0 %1643 }
 0x115   : > { %4768 = vst [vmem:[#allocation28_spill] sm:$0xff] %v3525_v6 }
 0x118   : > { %v3529_v9 = vpop.permute.xlu0 %1647 }
 0x119   : > { %v3534_v10 = vsel %vm1038_vm0, %v3527_v7, %v3529_v9 }
 0x14f   : > { %v643_v18 = vpop.f32.mrf.mxu0 }
 0x150   : > { %v644_v21 = vadd.f32 %v643_v18, %v522_v16 }
 0x151   : > { %v3546_v24 = vpop.f32.mrf.mxu0 }
 0x152   : > { %4770 = vst [vmem:[#allocation30_spill] sm:$0xff] %v3546_v24  ;;  %v736_v25 = vrot.slane %v644_v21, %v3541_v17 }
 0x153   : > { %v647_v27 = vpop.f32.mrf.mxu0 }
 0x154   : > { %v939_v28 = vrot.slane %v736_v25, %v3379_v38  ;;  %v960_v29 = vrot.slane %v736_v25, %v3544_v22  ;;  %v648_v36 = vadd.f32 %v647_v27, %v522_v16  ;;  %v952_v37 = vrot.slane %v736_v25, %v3470_v44 }
 0x155   : > { %v3556_v33 = vpop.f32.mrf.mxu0 }
 0x156   : > { %4773 = vst [vmem:[#allocation31_spill] sm:$0xff] %v3556_v33  ;;  %v940_v35 = vcombine.high %v939_v28, %v939_v28  ;;  %961 = vrot.lane.b32.xlu0 %v960_v29, %s3146_s16  ;;  %v743_v8 = vrot.slane %v648_v36, %v3541_v17 }
 0x157   : > { %v653_v0 = vpop.f32.mrf.mxu0 }
 0x158   : > { %947 = vst.msk [vmem:[#allocation2 + $0x8] ss:$8 sm:$0xf] %vm3552_vm1, %v940_v35  ;;  %v654_v40 = vadd.f32 %v653_v0, %v522_v16  ;;  %v794_v45 = vcombine.low %v736_v25, %v743_v8  ;;  %v795_v46 = vcombine.high %v736_v25, %v743_v8 }
 0x159   : > { %v3562_v39 = vpop.f32.mrf.mxu0 }
 0x15a   : > { %4774 = vst [vmem:[#allocation32_spill] sm:$0xff] %v3562_v39  ;;  %953 = vrot.lane.b32.xlu0 %v952_v37, %s3146_s16  ;;  %v750_v11 = vrot.slane %v654_v40, %v3541_v17  ;;  %v804_v27 = vrot.slane %v794_v45, %v3357_v19  ;;  %v811_v28 = vrot.slane %v795_v46, %v3357_v19 }
 0x15b   : > { %v657_v41 = vpop.f32.mrf.mxu0 }
 0x15c   : > { %v658_v42 = vadd.f32 %v657_v41, %v522_v16 }
 0x15d   : > { %v3566_v43 = vpop.f32.mrf.mxu0 }
 0x15e   : > { %4775 = vst [vmem:[#allocation33_spill] sm:$0xff] %v3566_v43  ;;  %v757_v12 = vrot.slane %v658_v42, %v3541_v17 }
 0x15f   : > { %v663_v14 = vpop.f32.mrf.mxu0 }
 0x160   : > { %v796_v15 = vcombine.low %v750_v11, %v757_v12  ;;  %v797_v18 = vcombine.high %v750_v11, %v757_v12  ;;  %v664_v45 = vadd.f32 %v663_v14, %v522_v16 }
 0x161   : > { %v3570_v21 = vpop.f32.mrf.mxu0 }
 0x162   : > { %4776 = vst [vmem:[#allocation34_spill] sm:$0xff] %v3570_v21  ;;  %v818_v29 = vrot.slane %v796_v15, %v3357_v19  ;;  %v825_v35 = vrot.slane %v797_v18, %v3357_v19  ;;  %v764_v18 = vrot.slane %v664_v45, %v3541_v17 }
 0x163   : > { %v667_v36 = vpop.f32.mrf.mxu0 }
 0x164   : > { %v827_v0 = vcombine.high %v804_v27, %v818_v29  ;;  %v828_v25 = vcombine.low %v811_v28, %v825_v35  ;;  %v829_v37 = vcombine.high %v811_v28, %v825_v35  ;;  %v826_v40 = vcombine.low %v804_v27, %v818_v29 }
 0x165   : > { %v3576_v8 = vpop.f32.mrf.mxu0  ;;  %v668_v12 = vadd.f32 %v667_v36, %v522_v16  ;;  %v3601_v35 = vsel %vm1038_vm0, %v3503_v60, %v3510_v62  ;;  %v3619_v60 = vsel %vm1038_vm0, %v3525_v6, %v3527_v7 }
 0x166   : > { %4777 = vst [vmem:[#allocation35_spill] sm:$0xff] %v3576_v8  ;;  %v3578_v41 = vrot.slane %v827_v0, 7  ;;  %v3580_v42 = vrot.slane %v828_v25, 7  ;;  %v3582_v11 = vrot.slane %v829_v37, 7  ;;  %v3584_v21 = vrot.slane %v826_v40, 7  ;;  %4780 = vst [vmem:[#allocation38_spill] sm:$0xff] %v3619_v60 }
 0x167   : > { %v673_v46 = vpop.f32.mrf.mxu0  ;;  %v771_v27 = vrot.slane %v668_v12, %v3541_v17  ;;  %v3621_v12 = vpop.permute.xlu1 %1649 }
 0x168   : > { %892 = vst [vmem:[#allocation2 + $0x10] sm:$0xfe] %v3578_v41  ;;  %893 = vst [vmem:[#allocation2 + $0x18] sm:$0xfe] %v3580_v42  ;;  %918 = vrot.lane.b32.xlu0 %v3582_v11, %s3146_s16  ;;  %v674_v15 = vadd.f32 %v673_v46, %v522_v16  ;;  %903 = vrot.lane.b32.xlu1 %v3584_v21, %s3146_s16  ;;  %v1653_v33 = vsel %vm1038_vm0, %v3529_v9, %v3621_v12 }
 0x169   : > { %894 = vst [vmem:[#allocation2 + $0x20] sm:$0xfe] %v3582_v11  ;;  %891 = vst [vmem:[#allocation2 + $0x8] sm:$0xfe] %v3584_v21  ;;  %v3594_v14 = vpop.f32.mrf.mxu0  ;;  %v830_v40 = vcombine.low %v764_v18, %v771_v27  ;;  %v831_v45 = vcombine.high %v764_v18, %v771_v27 }
 0x16a   : > { %4778 = vst [vmem:[#allocation36_spill] sm:$0xff] %v3594_v14  ;;  %v778_v36 = vrot.slane %v674_v15, %v3541_v17 }
 0x16b   : > { %v677_v28 = vpop.f32.mrf.mxu0  ;;  %v847_v24 = vrot.slane %v831_v45, %v3357_v19 }
 0x16c   : > { %v678_v29 = vadd.f32 %v677_v28, %v522_v16  ;;  %v3614_v16 = vsel %vm1038_vm0, %v3516_v3, %v3523_v5 }
 0x16d   : > { %4779 = vst [vmem:[#allocation37_spill] sm:$0xff] %v3614_v16 }
 0x16e   : > { %v3605_v0 = vrot.slane %v678_v29, %v3541_v17 }
 0x16f   : > { %v3607_v25 = vld [vmem:[#allocation2 + $0x10] sm:$0xff]  ;;  %v3609_v37 = vld [vmem:[#allocation2 + $0x18] sm:$0xff] }
 0x170   : > { %v3625_v46 = vmul.f32 %v3508_v61, %v3607_v25  ;;  %v3629_v15 = vmul.f32 %v3601_v35, %v3609_v37  ;;  %v3631_v18 = vld [vmem:[#allocation2 + $0x10] sm:$0xfe]  ;;  %v3633_v27 = vld [vmem:[#allocation2 + $0x18] sm:$0xfe]  ;;  %v3639_v7 = vld [vmem:[#allocation2 + $0x8] sm:$0xfc]  ;;  %v832_v28 = vcombine.low %v778_v36, %v3605_v0  ;;  %v833_v29 = vcombine.high %v778_v36, %v3605_v0 }
 0x171   : > { %v3637_v3 = vmul.f32 %v3521_v4, %v3631_v18  ;;  %4783 = vst [vmem:[#allocation41_spill] sm:$0xff] %v3639_v7  ;;  %v3645_v17 = vmul.f32 %v3614_v16, %v3633_v27  ;;  %v3649_v14 = vmul.f32 %v3619_v60, %v3639_v7  ;;  %v971_v8 = vrot.slane %v3605_v0, %v3379_v38  ;;  %v3653_v43 = vld [vmem:[#allocation2 + $0x10] sm:$0xfc]  ;;  %v3655_v39 = vld [vmem:[#allocation2 + $0x18] sm:$0xfc]  ;;  %v3677_v45 = vld [vmem:[#allocation2 + $0x8] sm:$0xff] }
 0x172   : > { %4781 = vst [vmem:[#allocation39_spill] sm:$0xff] %v3625_v46  ;;  %4782 = vst [vmem:[#allocation40_spill] sm:$0xff] %v3629_v15  ;;  %v840_v36 = vrot.slane %v830_v40, %v3357_v19  ;;  %v854_v6 = vrot.slane %v832_v28, %v3357_v19  ;;  %v861_v15 = vrot.slane %v833_v29, %v3357_v19  ;;  %v3766_v4 = vld [vmem:[#allocation2 + $0x20] sm:$0xfc] }
 0x173   : > { %4784 = vst [vmem:[#allocation42_spill] sm:$0xff] %v3655_v39  ;;  %974 = vst.msk [vmem:[#allocation2 + $0x69] ss:$8 sm:$0xf] %vm3552_vm1, %v971_v8  ;;  %v3668_v38 = vmul.f32 %v3534_v10, %v3653_v43  ;;  %v3672_v46 = vrot.slane %v3364_v26, %v3470_v44  ;;  %v3675_v40 = vmul.f32 %v1653_v33, %v3655_v39 }
 0x174   : > { %v863_v9 = vcombine.high %v840_v36, %v854_v6  ;;  %v864_v62 = vcombine.low %v847_v24, %v861_v15  ;;  %v987_v30 = vrot.slane %v3605_v0, %v3444_v34  ;;  %v3683_v8 = vrot.slane %v3362_v23, %v3470_v44  ;;  %4788 = vst [vmem:[#allocation46_spill] sm:$0xff] %v3766_v4 }
 0x175   : > { %v1083_v19 = vmul.f32 %v3672_v46, %v3677_v45  ;;  %v3690_v39 = vrot.slane %v3372_v32, %v3470_v44  ;;  %v862_v16 = vcombine.low %v840_v36, %v854_v6  ;;  %v1179_v6 = vmul.f32 %v3477_v48, %v3677_v45 }
 0x176   : > { %v873_v28 = vrot.slane %v863_v9, 7  ;;  %v875_v29 = vrot.slane %v864_v62, 7  ;;  %988 = vrot.lane.b32.xlu0 %v987_v30, %s3146_s16  ;;  %v1084_v30 = vmul.f32 %v3683_v8, %v3607_v25  ;;  %v1172_v36 = vsel %vm929_vm3, %v3475_v47, %v3481_v50 }
 0x177   : > { %1099 = vrot.lane.b32.xlu1 %v1083_v19, %s3144_s9 }
 0x178   : > { %900 = vst [vmem:[#allocation2 + $0x70] sm:$0x1] %v873_v28  ;;  %901 = vst [vmem:[#allocation2 + $0x78] sm:$0x1] %v875_v29  ;;  %v3694_v34 = vsel %vm866_vm2, %v3578_v41, %v873_v28  ;;  %v3698_v7 = vsel %vm866_vm2, %v3580_v42, %v875_v29  ;;  %v3712_v41 = vrot.slane %v3370_v31, %v3470_v44  ;;  %v3714_v28 = vld [vmem:[#allocation2 + $0x20] sm:$0xff] }
 0x179   : > { %v3702_v62 = vmul.f32 %v3534_v10, %v3694_v34  ;;  %v3705_v9 = vmul.f32 %v1653_v33, %v3698_v7  ;;  %4785 = vst [vmem:[#allocation43_spill] sm:$0xff] %v3714_v28  ;;  %v865_v42 = vcombine.high %v847_v24, %v861_v15  ;;  %v1085_v29 = vmul.f32 %v3690_v39, %v3609_v37 }
 0x17a   : > { %1101 = vrot.lane.b32.xlu0 %v1084_v30, %s3144_s9  ;;  %v1086_v19 = vmul.f32 %v3712_v41, %v3714_v28  ;;  %v3725_v44 = vsel %vm929_vm3, %v3477_v48, %v3475_v47  ;;  %v871_v15 = vrot.slane %v862_v16, 7  ;;  %v1173_v47 = vsel %vm929_vm3, %v3481_v50, %v3479_v49 }
 0x17b   : > { %v877_v60 = vrot.slane %v865_v42, 7  ;;  %1103 = vrot.lane.b32.xlu1 %v1085_v29, %s3144_s9  ;;  %v979_v50 = vrot.slane %v3605_v0, %v3411_v1  ;;  %v3789_v1 = vmul.f32 %v3621_v12, %v3766_v4 }
 0x17c   : > { %899 = vst [vmem:[#allocation2 + $0x68] sm:$0x1] %v871_v15  ;;  %v3750_v16 = vsel %vm866_vm2, %v3584_v21, %v871_v15  ;;  %v1372_v21 = vsub.s32 4, %v3352_v13 }
 0x17d   : > { %902 = vst [vmem:[#allocation2 + $0x80] sm:$0x1] %v877_v60  ;;  %v3729_v24 = vsel %vm866_vm2, %v3582_v11, %v877_v60 }
 0x17e   : > { %1105 = vrot.lane.b32.xlu0 %v1086_v19, %s3144_s9  ;;  %v1180_v19 = vmul.f32 %v3725_v44, %v3607_v25  ;;  %v3780_v13 = vrot.slane %v3364_v26, %v1372_v21  ;;  %v3792_v0 = vrot.slane %v3370_v31, %v1372_v21  ;;  %v1187_v49 = vmul.f32 %v1173_v47, %v3729_v24 }
 0x17f   : > { %v3731_v30 = vld [vmem:[#allocation2 + $0x70] sm:$0x3]  ;;  %v3733_v42 = vld [vmem:[#allocation2 + $0x78] sm:$0x3]  ;;  %1199 = vrot.lane.b32.xlu1 %v1179_v6, %s3146_s16  ;;  %v3764_v6 = vld [vmem:[#allocation2 + $0x20] sm:$0xfe] }
 0x180   : > { %4786 = vst [vmem:[#allocation44_spill] sm:$0xff] %v3731_v30  ;;  %4787 = vst [vmem:[#allocation45_spill] sm:$0xff] %v3733_v42  ;;  %v3743_v29 = vmul.f32 %v3534_v10, %v3731_v30  ;;  %v3746_v11 = vmul.f32 %v1653_v33, %v3733_v42  ;;  %v1181_v10 = vmul.f32 %v1172_v36, %v3609_v37 }
 0x181   : > { %v1182_v33 = vmul.f32 %v1173_v47, %v3714_v28  ;;  %v3773_v25 = vmul.f32 %v3523_v5, %v3764_v6  ;;  %v3777_v37 = vrot.slane %v3362_v23, %v1372_v21  ;;  %4790 = vst [vmem:[#allocation48_spill] sm:$0xff] %v3780_v13  ;;  %4792 = vst [vmem:[#allocation50_spill] sm:$0xff] %v3792_v0 }
 0x182   : > { %1201 = vrot.lane.b32.xlu0 %v1180_v19, %s3146_s16  ;;  %v3785_v19 = vsel %vm929_vm3, %v3485_v51, %v3483_v20  ;;  %v3834_v28 = vrot.slane %v3370_v31, %v3544_v22  ;;  %v1090_v31 = vmul.f32 %v3712_v41, %v3729_v24  ;;  %v1184_v41 = vmul.f32 %v3477_v48, %v3750_v16 }
 0x183   : > { %1203 = vrot.lane.b32.xlu1 %v1181_v10, %s3146_s16  ;;  %4789 = vst [vmem:[#allocation47_spill] sm:$0xff] %v3777_v37  ;;  %4791 = vst [vmem:[#allocation49_spill] sm:$0xff] %v3785_v19  ;;  %v3800_v10 = vsel %vm929_vm3, %v3483_v20, %v3489_v53  ;;  %v3821_v20 = vsel %vm929_vm3, %v3493_v55, %v3495_v56 }
 0x184   : > { %4794 = vst [vmem:[#allocation52_spill] sm:$0xff] %v3800_v10  ;;  %4797 = vst [vmem:[#allocation55_spill] sm:$0xff] %v3821_v20 }
 0x186   : > { %1205 = vrot.lane.b32.xlu0 %v1182_v33, %s3146_s16  ;;  %v3805_v33 = vsel %vm929_vm3, %v3489_v53, %v3487_v52  ;;  %v3826_v53 = vsel %vm929_vm3, %v3495_v56, %v3497_v57  ;;  %v3830_v52 = vrot.slane %v3364_v26, %v3544_v22  ;;  %v3850_v26 = vrot.slane %v3372_v32, %v3544_v22 }
 0x187   : > { %922 = vrot.lane.b32.xlu1 %v877_v60, %s3146_s16  ;;  %v3795_v60 = vrot.slane %v3372_v32, %v1372_v21  ;;  %4795 = vst [vmem:[#allocation53_spill] sm:$0xff] %v3805_v33  ;;  %v3816_v21 = vrot.slane %v3362_v23, %v3544_v22  ;;  %v3839_v23 = vsel %vm1038_vm0, %v3499_v58, %v3501_v59  ;;  %v3863_v22 = vld [vmem:[#allocation2 + $0x8] sm:$0xfe] }
 0x188   : > { %4798 = vst [vmem:[#allocation56_spill] sm:$0xff] %v3850_v26  ;;  %v1088_v32 = vmul.f32 %v3683_v8, %v3694_v34  ;;  %v1089_v59 = vmul.f32 %v3690_v39, %v3698_v7  ;;  %v3870_v58 = vmul.f32 %v3777_v37, %v3694_v34  ;;  %v3874_v56 = vmul.f32 %v3780_v13, %v3750_v16 }
 0x189   : > { %4793 = vst [vmem:[#allocation51_spill] sm:$0xff] %v3795_v60  ;;  %4796 = vst [vmem:[#allocation54_spill] sm:$0xff] %v3816_v21  ;;  %v1087_v8 = vmul.f32 %v3672_v46, %v3750_v16  ;;  %v3887_v39 = vmul.f32 %v3795_v60, %v3698_v7  ;;  %v1186_v57 = vmul.f32 %v1172_v36, %v3698_v7 }
 0x18a   : > { %980 = vrot.lane.b32.xlu0 %v979_v50, %s3146_s16  ;;  %v3810_v50 = vsel %vm929_vm3, %v3491_v54, %v3493_v55  ;;  %v3844_v55 = vsel %vm1038_vm0, %v3512_v63, %v3514_v2  ;;  %v1387_v2 = vmul.f32 %v3777_v37, %v3631_v18  ;;  %v1185_v63 = vmul.f32 %v3725_v44, %v3694_v34 }
 0x18b   : > { %920 = vrot.lane.b32.xlu1 %v3729_v24, %s3146_s16  ;;  %v3896_v46 = vmul.f32 %v3785_v19, %v3694_v34  ;;  %v1389_v54 = vmul.f32 %v3792_v0, %v3764_v6  ;;  %v1388_v44 = vmul.f32 %v3795_v60, %v3633_v27  ;;  %v1511_v37 = vmul.f32 %v3785_v19, %v3631_v18 }
 0x18c   : > { %v1413_v47 = vrot.slane %v1387_v2, 1  ;;  %v1510_v18 = vmul.f32 %v3485_v51, %v3863_v22  ;;  %v3927_v48 = vmul.f32 %v3805_v33, %v3764_v6  ;;  %v4801_v2 = vrot.slane %v3870_v58, 1 }
 0x18d   : > { %4799 = vst [vmem:[#allocation57_spill] sm:$0xff] %v3896_v46  ;;  %v1416_v4 = vrot.slane %v1388_v44, 1  ;;  %v1543_v60 = vrot.slane %v1511_v37, 1  ;;  %v4804_v6 = vrot.slane %v3887_v39, 1  ;;  %v3951_v37 = vmul.f32 %v3810_v50, %v3694_v34 }
 0x18e   : > { %907 = vrot.lane.b32.xlu0 %v871_v15, %s3146_s16  ;;  %v3883_v15 = vmul.f32 %v3792_v0, %v3729_v24  ;;  %v1415_v36 = vsel %vm1324_vm4, %v1413_v47, %v4801_v2  ;;  %v3947_v47 = vmul.f32 %v3805_v33, %v3729_v24  ;;  %v1540_v2 = vrot.slane %v1510_v18, 1  ;;  %v3980_v18 = vld [vmem:[#allocation2 + $0x80] sm:$0x3] }
 0x18f   : > { %905 = vrot.lane.b32.xlu1 %v3750_v16, %s3146_s16  ;;  %v3943_v44 = vsel %vm1324_vm4, %v1416_v4, %v4804_v6  ;;  %v3964_v4 = vmul.f32 %v3839_v23, %v3677_v45  ;;  %v3989_v45 = vmul.f32 %v3816_v21, %v3694_v34  ;;  %v3993_v6 = vmul.f32 %v3839_v23, %v3750_v16 }
 0x190   : > { %v1886_v23 = vmul.f32 %v3810_v50, %v3731_v30 }
 0x191   : > { %4806 = vst [vmem:[#allocation59_spill] sm:$0xff] %v3964_v4  ;;  %4807 = vst [vmem:[#allocation60_spill] sm:$0xff] %v3993_v6  ;;  %v4811_v6 = vld [vmem:[#allocation37_spill] sm:$0xff] }
 0x192   : > { %1109 = vrot.lane.b32.xlu0 %v1088_v32, %s3144_s9  ;;  %v1386_v32 = vmul.f32 %v3780_v13, %v3863_v22  ;;  %v1302_v4 = vmul.f32 %v4811_v6, %v3698_v7 }
 0x193   : > { %1107 = vrot.lane.b32.xlu1 %v1087_v8, %s3144_s9  ;;  %v3912_v8 = vmul.f32 %v3485_v51, %v3750_v16  ;;  %v4032_v51 = vld [vmem:[#allocation2 + $0x78] sm:$0x1] }
 0x194   : > { %v1410_v13 = vrot.slane %v1386_v32, 1  ;;  %v4802_v32 = vrot.slane %v3874_v56, 1 }
 0x195   : > { %4800 = vst [vmem:[#allocation58_spill] sm:$0xff] %v3912_v8  ;;  %v4725_v0 = vrot.slane %v3912_v8, 1 }
 0x196   : > { %1113 = vrot.lane.b32.xlu0 %v1090_v31, %s3144_s9  ;;  %v1419_v31 = vrot.slane %v1389_v54, 1  ;;  %v1412_v26 = vsel %vm1324_vm4, %v1410_v13, %v4802_v32  ;;  %v4803_v54 = vrot.slane %v3883_v15, 1  ;;  %v4805_v13 = vrot.slane %v3896_v46, 1  ;;  %v4026_v46 = vld [vmem:[#allocation2 + $0x70] sm:$0x1] }
 0x197   : > { %1111 = vrot.lane.b32.xlu1 %v1089_v59, %s3144_s9  ;;  %v1300_v32 = vmul.f32 %v3844_v55, %v3750_v16 }
 0x198   : > { %v1421_v59 = vsel %vm1324_vm4, %v1419_v31, %v4803_v54  ;;  %v3960_v31 = vmul.f32 %v3800_v10, %v3633_v27  ;;  %v3970_v54 = vmul.f32 %v3800_v10, %v3698_v7  ;;  %v3978_v27 = vmul.f32 %v3826_v53, %v3729_v24 }
 0x199   : > { %v1329_v8 = vrot.slane %v1300_v32, 1  ;;  %v1335_v10 = vrot.slane %v1302_v4, 1 }
 0x19a   : > { %1209 = vrot.lane.b32.xlu0 %v1184_v41, %s3146_s16  ;;  %v3956_v41 = vsel %vm1324_vm4, %v1543_v60, %v4805_v13  ;;  %v3974_v60 = vmul.f32 %v3816_v21, %v3653_v43  ;;  %v3997_v13 = vmul.f32 %v3508_v61, %v3694_v34  ;;  %v1888_v61 = vmul.f32 %v3826_v53, %v3980_v18 }
 0x19b   : > { %1211 = vrot.lane.b32.xlu1 %v1185_v63, %s3146_s16  ;;  %v3985_v63 = vsel %vm1324_vm4, %v1540_v2, %v4725_v0  ;;  %v4004_v2 = vmul.f32 %v3821_v20, %v3698_v7  ;;  %v4008_v0 = vmul.f32 %v3601_v35, %v3698_v7  ;;  %v1887_v35 = vmul.f32 %v3821_v20, %v3733_v42 }
 0x19c   : > { %4808 = vst [vmem:[#allocation61_spill] sm:$0xff] %v3997_v13  ;;  %v1922_v21 = vrot.slane %v1886_v23, 2  ;;  %v4812_v20 = vrot.slane %v3951_v37, 2  ;;  %v4813_v32 = vrot.slane %v3978_v27, 2 }
 0x19d   : > { %4809 = vst [vmem:[#allocation62_spill] sm:$0xff] %v4008_v0  ;;  %v4810_v0 = vld [vmem:[#allocation27_spill] sm:$0xff]  ;;  %v4735_v19 = vrot.slane %v4004_v2, 2  ;;  %v1924_v33 = vrot.slane %v1887_v35, 2  ;;  %v4817_v35 = vrot.slane %v3645_v17, 1 }
 0x19e   : > { %1213 = vrot.lane.b32.xlu0 %v1186_v57, %s3146_s16  ;;  %v1295_v57 = vmul.f32 %v3844_v55, %v3863_v22  ;;  %v1301_v13 = vmul.f32 %v4810_v0, %v3694_v34  ;;  %v1926_v22 = vrot.slane %v1888_v61, 2  ;;  %v4034_v34 = vld [vmem:[#allocation2 + $0x68] sm:$0x3]  ;;  %v4039_v23 = vsel %vm1689_vm5, %v4812_v20, %v1922_v21 }
 0x19f   : > { %1215 = vrot.lane.b32.xlu1 %v1187_v49, %s3146_s16  ;;  %v4029_v49 = vld [vmem:[#allocation2 + $0x68] sm:$0x1]  ;;  %v4816_v21 = vrot.slane %v3637_v3, 1  ;;  %v4820_v3 = vrot.slane %v3705_v9, 2 }
 0x1a0   : > { %v1328_v30 = vrot.slane %v1295_v57, 1  ;;  %v1332_v42 = vrot.slane %v1301_v13, 1  ;;  %v4815_v13 = vld [vmem:[#allocation38_spill] sm:$0xff]  ;;  %v4055_v57 = vsel %vm1689_vm5, %v4735_v19, %v1924_v33  ;;  %v1305_v17 = vmul.f32 %v3844_v55, %v4029_v49 }
 0x1a1   : > { %v1665_v4 = vmul.f32 %v4815_v13, %v3750_v16  ;;  %v4824_v55 = vrot.slane %v3746_v11, 2 }
 0x1a2   : > { %1432 = vrot.lane.b32.xlu0 %v1415_v36, %s3144_s9  ;;  %v4044_v36 = vsel %vm1689_vm5, %v4813_v32, %v1926_v22  ;;  %v4047_v61 = vsel %vm1324_vm4, %v1328_v30, %v1329_v8  ;;  %v4060_v20 = vsel %vm1324_vm4, %v4816_v21, %v1332_v42  ;;  %v4065_v30 = vsel %vm1324_vm4, %v4817_v35, %v1335_v10 }
 0x1a3   : > { %4814 = vst [vmem:[#allocation27_spill] sm:$0xff] %v4044_v36  ;;  %1430 = vrot.lane.b32.xlu1 %v1412_v26, %s3144_s9  ;;  %v4818_v22 = vrot.slane %v3702_v62, 2  ;;  %v4819_v32 = vrot.slane %v3668_v38, 2  ;;  %v4074_v36 = vld [vmem:[#allocation2 + $0x80] sm:$0x1]  ;;  %v1694_v33 = vrot.slane %v1665_v4, 2  ;;  %v1306_v35 = vmul.f32 %v4810_v0, %v4026_v46 }
 0x1a4   : > { %v4821_v21 = vrot.slane %v3675_v40, 2  ;;  %v1307_v38 = vmul.f32 %v4811_v6, %v4032_v51  ;;  %v1670_v4 = vmul.f32 %v4815_v13, %v4034_v34  ;;  %v4823_v40 = vrot.slane %v3702_v62, 2 }
 0x1a5   : > { %v4072_v26 = vsel %vm1689_vm5, %v4819_v32, %v4818_v22  ;;  %v4822_v22 = vrot.slane %v3743_v29, 2  ;;  %v4104_v0 = vsel %vm1689_vm5, %v4820_v3, %v4824_v55  ;;  %v1342_v13 = vrot.slane %v1305_v17, 1 }
 0x1a6   : > { %v4081_v19 = vsel %vm1689_vm5, %v4821_v21, %v4820_v3  ;;  %1436 = vrot.lane.b32.xlu0 %v1421_v59, %s3144_s9  ;;  %v4825_v59 = vrot.slane %v3649_v14, 2  ;;  %v1344_v21 = vrot.slane %v1306_v35, 1  ;;  %v1303_v62 = vmul.f32 %v3523_v5, %v3729_v24 }
 0x1a7   : > { %v4097_v32 = vsel %vm1689_vm5, %v4823_v40, %v4822_v22  ;;  %1434 = vrot.lane.b32.xlu1 %v3943_v44, %s3144_s9  ;;  %v1346_v29 = vrot.slane %v1307_v38, 1  ;;  %v1707_v11 = vrot.slane %v1670_v4, 2  ;;  %v1308_v9 = vmul.f32 %v3523_v5, %v4074_v36 }
 0x1a8   : > { %v4109_v6 = vsel %vm1689_vm5, %v4825_v59, %v1694_v33  ;;  %v1668_v22 = vmul.f32 %v3621_v12, %v3729_v24  ;;  %v4120_v14 = vsel %vm1324_vm4, %v1329_v8, %v1342_v13  ;;  %v4123_v17 = vsel %vm1324_vm4, %v1332_v42, %v1344_v21 }
 0x1a9   : > { %v1338_v35 = vrot.slane %v1303_v62, 1  ;;  %v1673_v40 = vmul.f32 %v3621_v12, %v3980_v18  ;;  %v4130_v44 = vsel %vm1324_vm4, %v1335_v10, %v1346_v29  ;;  %v4133_v5 = vsel %vm1689_vm5, %v1694_v33, %v1707_v11  ;;  %v4827_v33 = vld [vmem:[#allocation41_spill] sm:$0xff] }
 0x1aa   : > { %1567 = vrot.lane.b32.xlu0 %v3956_v41, %s3146_s16  ;;  %v1348_v38 = vrot.slane %v1308_v9, 1  ;;  %v1703_v4 = vrot.slane %v1668_v22, 2  ;;  %v4737_v8 = vrot.slane %v3970_v54, 1  ;;  %v4138_v42 = vmul.f32 %v3830_v52, %v3750_v16  ;;  %v4831_v22 = vld [vmem:[#allocation46_spill] sm:$0xff] }
 0x1ab   : > { %v4826_v55 = vrot.slane %v3773_v25, 1  ;;  %v1713_v41 = vrot.slane %v1673_v40, 2  ;;  %1565 = vrot.lane.b32.xlu1 %v3985_v63, %s3146_s16  ;;  %v1546_v10 = vrot.slane %v3960_v31, 1  ;;  %v1751_v3 = vmul.f32 %v3830_v52, %v4827_v33  ;;  %v4832_v40 = vld [vmem:[#allocation56_spill] sm:$0xff] }
 0x1ac   : > { %v4151_v59 = vsel %vm1324_vm4, %v1338_v35, %v1348_v38  ;;  %v4828_v13 = vrot.slane %v3789_v1, 2  ;;  %v4829_v25 = vrot.slane %v3947_v47, 1  ;;  %v4830_v62 = vrot.slane %v3927_v48, 1 }
 0x1ad   : > { %v4143_v12 = vsel %vm1324_vm4, %v4826_v55, %v1338_v35  ;;  %v4736_v63 = vrot.slane %v3989_v45, 2  ;;  %v4166_v31 = vmul.f32 %v3834_v28, %v3729_v24  ;;  %v4169_v11 = vsel %vm1689_vm5, %v1703_v4, %v1713_v41  ;;  %v4833_v41 = vld [vmem:[#allocation42_spill] sm:$0xff] }
 0x1ae   : > { %v4156_v21 = vsel %vm1689_vm5, %v4828_v13, %v1703_v4  ;;  %v1551_v29 = vsel %vm1324_vm4, %v4830_v62, %v4829_v25  ;;  %v1778_v1 = vrot.slane %v3974_v60, 2  ;;  %v1548_v9 = vsel %vm1324_vm4, %v1546_v10, %v4737_v8  ;;  %v4834_v13 = vld [vmem:[#allocation47_spill] sm:$0xff] }
 0x1af   : > { %1571 = vrot.lane.b32.xlu0 %v1551_v29, %s3146_s16  ;;  %v4738_v48 = vrot.slane %v4138_v42, 2  ;;  %v1754_v35 = vmul.f32 %v3834_v28, %v4831_v22  ;;  %v4181_v38 = vmul.f32 %v4832_v40, %v3698_v7  ;;  %1569 = vrot.lane.b32.xlu1 %v1548_v9, %s3146_s16  ;;  %v1775_v4 = vrot.slane %v1751_v3, 2  ;;  %v4835_v29 = vld [vmem:[#allocation48_spill] sm:$0xff] }
 0x1b0   : > { %v1780_v60 = vsel %vm1689_vm5, %v1778_v1, %v4736_v63  ;;  %v1785_v55 = vrot.slane %v4166_v31, 2  ;;  %v1753_v10 = vmul.f32 %v4832_v40, %v4833_v41  ;;  %v1395_v25 = vmul.f32 %v4834_v13, %v4026_v46 }
 0x1b1   : > { %v1777_v7 = vsel %vm1689_vm5, %v1775_v4, %v4738_v48  ;;  %v1784_v62 = vrot.slane %v1754_v35, 2  ;;  %v1782_v3 = vrot.slane %v4181_v38, 2  ;;  %v1394_v1 = vmul.f32 %v4835_v29, %v4029_v49  ;;  %v4837_v29 = vld [vmem:[#allocation51_spill] sm:$0xff] }
 0x1b2   : > { %v1781_v63 = vrot.slane %v1753_v10, 2  ;;  %v1424_v13 = vrot.slane %v1395_v25, 1  ;;  %v1396_v48 = vmul.f32 %v4837_v29, %v4032_v51  ;;  %v4840_v29 = vld [vmem:[#allocation22_spill] sm:$0xff] }
 0x1b3   : > { %1797 = vrot.lane.b32.xlu0 %v1780_v60, %s3144_s9  ;;  %1795 = vrot.lane.b32.xlu1 %v1777_v7, %s3144_s9  ;;  %v1786_v9 = vsel %vm1689_vm5, %v1784_v62, %v1785_v55  ;;  %v4836_v60 = vld [vmem:[#allocation50_spill] sm:$0xff]  ;;  %v1422_v4 = vrot.slane %v1394_v1, 1  ;;  %v4838_v7 = vrot.slane %v3870_v58, 1  ;;  %v4216_v62 = vpop.permute.xlu0 %1996  ;;  %v1876_v1 = vmul.f32 %v3810_v50, %v3653_v43 }
 0x1b4   : > { %v1397_v8 = vmul.f32 %v4836_v60, %v4074_v36  ;;  %v1783_v35 = vsel %vm1689_vm5, %v1781_v63, %v1782_v3  ;;  %v1426_v63 = vrot.slane %v1396_v48, 1  ;;  %v4841_v58 = vrot.slane %v3883_v15, 1 }
 0x1b5   : > { %v1425_v10 = vsel %vm1324_vm4, %v4838_v7, %v1424_v13  ;;  %v1875_v13 = vmul.f32 %v4840_v29, %v4827_v33  ;;  %v1908_v43 = vrot.slane %v1876_v1, 2 }
 0x1b6   : > { %v1428_v25 = vrot.slane %v1397_v8, 1 }
 0x1b7   : > { %1801 = vrot.lane.b32.xlu0 %v1786_v9, %s3144_s9  ;;  %1799 = vrot.lane.b32.xlu1 %v1783_v35, %s3144_s9  ;;  %v4839_v9 = vrot.slane %v3874_v56, 1  ;;  %v4225_v35 = vmul.f32 %v4840_v29, %v3750_v16  ;;  %v4842_v56 = vrot.slane %v3887_v39, 1  ;;  %v1878_v16 = vmul.f32 %v3826_v53, %v4831_v22  ;;  %v4241_v15 = vpop.permute.xlu0 %2000 }
 0x1b8   : > { %v1429_v8 = vsel %vm1324_vm4, %v4841_v58, %v1428_v25  ;;  %v1905_v7 = vrot.slane %v1875_v13, 2  ;;  %v4845_v25 = vld [vmem:[#allocation20_spill] sm:$0xff] }
 0x1b9   : > { %v1423_v60 = vsel %vm1324_vm4, %v4839_v9, %v1422_v4  ;;  %v1427_v48 = vsel %vm1324_vm4, %v4842_v56, %v1426_v63  ;;  %v1906_v50 = vrot.slane %v4225_v35, 2  ;;  %v4843_v4 = vrot.slane %v3951_v37, 2 }
 0x1ba   : > { %v1520_v9 = vmul.f32 %v4845_v25, %v4029_v49  ;;  %v1914_v22 = vrot.slane %v1878_v16, 2  ;;  %v4847_v37 = vrot.slane %v3978_v27, 2  ;;  %v4848_v49 = vld [vmem:[#allocation52_spill] sm:$0xff]  ;;  %v4849_v56 = vrot.slane %v4004_v2, 2  ;;  %v4851_v16 = vld [vmem:[#allocation58_spill] sm:$0xff]  ;;  %v4855_v25 = vld [vmem:[#allocation57_spill] sm:$0xff] }
 0x1bb   : > { %1440 = vrot.lane.b32.xlu0 %v1425_v10, %s3144_s9  ;;  %1438 = vrot.lane.b32.xlu1 %v1423_v60, %s3144_s9  ;;  %v1910_v33 = vsel %vm1689_vm5, %v1908_v43, %v4843_v4  ;;  %v4844_v10 = vld [vmem:[#allocation55_spill] sm:$0xff]  ;;  %v1907_v53 = vsel %vm1689_vm5, %v1905_v7, %v1906_v50  ;;  %v4846_v60 = vld [vmem:[#allocation49_spill] sm:$0xff]  ;;  %v4852_v4 = vrot.slane %v4851_v16, 1  ;;  %v4853_v7 = vld [vmem:[#allocation44_spill] sm:$0xff] }
 0x1bc   : > { %v1877_v39 = vmul.f32 %v4844_v10, %v4833_v41  ;;  %v1521_v63 = vmul.f32 %v4846_v60, %v4026_v46  ;;  %v1916_v41 = vsel %vm1689_vm5, %v1914_v22, %v4847_v37  ;;  %v1555_v58 = vrot.slane %v1520_v9, 1  ;;  %v4850_v43 = vld [vmem:[#allocation53_spill] sm:$0xff]  ;;  %v4854_v10 = vld [vmem:[#allocation54_spill] sm:$0xff]  ;;  %v4862_v16 = vld [vmem:[#allocation19_spill] sm:$0xff] }
 0x1bd   : > { %v1523_v27 = vmul.f32 %v4850_v43, %v4074_v36  ;;  %v4856_v9 = vrot.slane %v4855_v25, 1  ;;  %v1759_v36 = vmul.f32 %v3830_v52, %v4034_v34  ;;  %v4857_v60 = vrot.slane %v3970_v54, 1  ;;  %v4859_v52 = vld [vmem:[#allocation45_spill] sm:$0xff] }
 0x1be   : > { %v1911_v1 = vrot.slane %v1877_v39, 2  ;;  %v1557_v46 = vrot.slane %v1521_v63, 1  ;;  %v1760_v39 = vmul.f32 %v4854_v10, %v4853_v7  ;;  %v4860_v54 = vrot.slane %v3989_v45, 2  ;;  %v4864_v10 = vld [vmem:[#allocation43_spill] sm:$0xff] }
 0x1bf   : > { %1444 = vrot.lane.b32.xlu0 %v1429_v8, %s3144_s9  ;;  %1442 = vrot.lane.b32.xlu1 %v1427_v48, %s3144_s9  ;;  %v1522_v8 = vmul.f32 %v4848_v49, %v4032_v51  ;;  %v1556_v51 = vsel %vm1324_vm4, %v4852_v4, %v1555_v58  ;;  %v1561_v22 = vrot.slane %v1523_v27, 1  ;;  %v4858_v58 = vrot.slane %v3947_v47, 1 }
 0x1c0   : > { %v1913_v48 = vsel %vm1689_vm5, %v1911_v1, %v4849_v56  ;;  %v1789_v37 = vrot.slane %v1760_v39, 2  ;;  %v1762_v1 = vmul.f32 %v3834_v28, %v3980_v18  ;;  %v4861_v28 = vrot.slane %v4138_v42, 2  ;;  %v4865_v39 = vld [vmem:[#allocation25_spill] sm:$0xff] }
 0x1c1   : > { %v1562_v49 = vsel %vm1324_vm4, %v4858_v58, %v1561_v22 }
 0x1c2   : > { %v1790_v56 = vsel %vm1689_vm5, %v4860_v54, %v1789_v37 }
 0x1c3   : > { %1932 = vrot.lane.b32.xlu0 %v1910_v33, %s3146_s16  ;;  %1930 = vrot.lane.b32.xlu1 %v1907_v53, %s3146_s16  ;;  %v1559_v33 = vrot.slane %v1522_v8, 1  ;;  %v1558_v53 = vsel %vm1324_vm4, %v4856_v9, %v1557_v46  ;;  %v1787_v8 = vrot.slane %v1759_v36, 2  ;;  %v4866_v9 = vld [vmem:[#allocation39_spill] sm:$0xff] }
 0x1c5   : > { %v1560_v63 = vsel %vm1324_vm4, %v4857_v60, %v1559_v33  ;;  %v1788_v18 = vsel %vm1689_vm5, %v4861_v28, %v1787_v8 }
 0x1c7   : > { %1936 = vrot.lane.b32.xlu0 %v1916_v41, %s3146_s16  ;;  %1934 = vrot.lane.b32.xlu1 %v1913_v48, %s3146_s16  ;;  %v4286_v41 = vpop.permute.xlu1 %1998  ;;  %v1793_v48 = vrot.slane %v1762_v1, 2 }
 0x1c8   : > { %v962_v13 = vpop.permute.xlu0 %961 }
 0x1c9   : > { %964 = vst.msk [vmem:[#allocation2 + $0x28] sm:$0x1] %vm931_vm6, %v962_v13  ;;  %v1761_v13 = vmul.f32 %v4832_v40, %v4859_v52  ;;  %v1794_v40 = vsel %vm1689_vm5, %v1785_v55, %v1793_v48  ;;  %v4867_v52 = vld [vmem:[#allocation40_spill] sm:$0xff] }
 0x1cb   : > { %1575 = vrot.lane.b32.xlu0 %v1556_v51, %s3146_s16  ;;  %1577 = vrot.lane.b32.xlu1 %v1558_v53, %s3146_s16  ;;  %v1791_v47 = vrot.slane %v1761_v13, 2  ;;  %v4304_v46 = vpop.permute.xlu1 %2002  ;;  %v4863_v51 = vld [vmem:[#allocation59_spill] sm:$0xff] }
 0x1cc   : > { %v954_v2 = vpop.permute.xlu0 %953 }
 0x1cd   : > { %956 = vst.msk [vmem:[#allocation2] sm:$0x1] %vm916_vm7, %v954_v2  ;;  %v1792_v45 = vsel %vm1689_vm5, %v1782_v3, %v1791_v47  ;;  %v1051_v2 = vmul.f32 %v4865_v39, %v4864_v10 }
 0x1cf   : > { %1579 = vrot.lane.b32.xlu0 %v1560_v63, %s3146_s16  ;;  %1581 = vrot.lane.b32.xlu1 %v1562_v49, %s3146_s16 }
 0x1d3   : > { %1805 = vrot.lane.b32.xlu0 %v1790_v56, %s3144_s9  ;;  %1803 = vrot.lane.b32.xlu1 %v1788_v18, %s3144_s9 }
 0x1d7   : > { %1809 = vrot.lane.b32.xlu0 %v1794_v40, %s3144_s9  ;;  %1807 = vrot.lane.b32.xlu1 %v1792_v45, %s3144_s9 }
 0x1da   : > { %v919_v42 = vpop.permute.xlu0 %918  ;;  %v904_v43 = vpop.permute.xlu1 %903 }
 0x1db   : > { %928 = vst.msk [vmem:[#allocation2 + $0x28] sm:$0xfe] %vm927_vm8, %v919_v42 }
 0x1dc   : > { %913 = vst.msk [vmem:[#allocation2] sm:$0xfe] %vm912_vm9, %v904_v43 }
 0x1e2   : > { %v1141_v27 = vld [vmem:[#allocation2 + $0x28] sm:$0xff] }
 0x1e3   : > { %v1183_v4 = vmul.f32 %v4862_v16, %v1141_v27 }
 0x1e5   : > { %1207 = vrot.lane.b32.xlu1 %v1183_v4, %s3146_s16  ;;  %v1472_v4 = vld [vmem:[#allocation2 + $0x28] sm:$0xfe] }
 0x1e8   : > { %v989_v31 = vpop.permute.xlu0 %988 }
 0x1e9   : > { %991 = vst.msk [vmem:[#allocation2 + $0x89] sm:$0x1] %vm931_vm6, %v989_v31  ;;  %v4318_v55 = vpop.permute.xlu1 %1099 }
 0x1ec   : > { %v1102_v38 = vpop.permute.xlu0 %1101 }
 0x1ed   : > { %v1115_v3 = vsel %vm1038_vm0, %v4318_v55, %v1102_v38  ;;  %v1104_v7 = vpop.permute.xlu1 %1103 }
 0x1ee   : > { %v1132_v33 = vadd.f32 %v1115_v3, %v4863_v51  ;;  %v1116_v25 = vsel %vm1038_vm0, %v1102_v38, %v1104_v7  ;;  %v4868_v51 = vld [vmem:[#allocation21_spill] sm:$0xff] }
 0x1ef   : > { %v1133_v53 = vadd.f32 %v1116_v25, %v4866_v9  ;;  %v1056_v25 = vmul.f32 %v4865_v39, %v3729_v24  ;;  %v4871_v24 = vld [vmem:[#allocation24_spill] sm:$0xff] }
 0x1f0   : > { %v1106_v22 = vpop.permute.xlu0 %1105 }
 0x1f1   : > { %v4327_v36 = vadd.f32 %v1106_v22, %v1051_v2  ;;  %v4329_v60 = vpop.permute.xlu1 %1199  ;;  %v1117_v37 = vsel %vm1038_vm0, %v1104_v7, %v1106_v22  ;;  %v1885_v7 = vmul.f32 %v4840_v29, %v4034_v34 }
 0x1f2   : > { %v1134_v13 = vadd.f32 %v1117_v37, %v4867_v52  ;;  %v4870_v52 = vld [vmem:[#allocation26_spill] sm:$0xff] }
 0x1f4   : > { %v1202_v63 = vpop.permute.xlu0 %1201 }
 0x1f5   : > { %v1220_v1 = vsel %vm1219_vm10, %v4329_v60, %v1202_v63  ;;  %v1204_v49 = vpop.permute.xlu1 %1203 }
 0x1f6   : > { %v1239_v58 = vadd.f32 %v1220_v1, %v1132_v33  ;;  %v1221_v8 = vsel %vm1219_vm10, %v1202_v63, %v1204_v49  ;;  %v1514_v33 = vmul.f32 %v4868_v51, %v1472_v4 }
 0x1f7   : > { %v1240_v54 = vadd.f32 %v1221_v8, %v1133_v53  ;;  %v4869_v53 = vld [vmem:[#allocation60_spill] sm:$0xff] }
 0x1f8   : > { %v4336_v56 = vpop.permute.xlu0 %1205  ;;  %v4339_v48 = vadd.f32 %v4047_v61, %v1239_v58  ;;  %v1552_v29 = vrot.slane %v1514_v33, 1 }
 0x1f9   : > { %v1222_v28 = vsel %vm1219_vm10, %v1204_v49, %v4336_v56  ;;  %v923_v47 = vpop.permute.xlu1 %922  ;;  %v4344_v40 = vadd.f32 %v4060_v20, %v1240_v54 }
 0x1fa   : > { %v1241_v18 = vadd.f32 %v1222_v28, %v1134_v13  ;;  %932 = vst.msk [vmem:[#allocation2 + $0x88] sm:$0x1] %vm931_vm6, %v923_v47  ;;  %v4872_v47 = vld [vmem:[#allocation23_spill] sm:$0xff] }
 0x1fc   : > { %v981_v45 = vpop.permute.xlu0 %980  ;;  %v4348_v42 = vadd.f32 %v4065_v30, %v1241_v18  ;;  %v1837_v18 = vld [vmem:[#allocation2 + $0x28] sm:$0xfc] }
 0x1fd   : > { %983 = vst.msk [vmem:[#allocation2 + $0x61] sm:$0x1] %vm916_vm7, %v981_v45  ;;  %v921_v43 = vpop.permute.xlu1 %920 }
 0x1fe   : > { %930 = vst.msk [vmem:[#allocation2 + $0x58] sm:$0xff] %vm929_vm3, %v921_v43 }
 0x200   : > { %v908_v61 = vpop.permute.xlu0 %907 }
 0x201   : > { %917 = vst.msk [vmem:[#allocation2 + $0x60] sm:$0x1] %vm916_vm7, %v908_v61  ;;  %v906_v27 = vpop.permute.xlu1 %905  ;;  %v1473_v20 = vld [vmem:[#allocation2 + $0x88] sm:$0x1]  ;;  %v4873_v61 = vld [vmem:[#allocation61_spill] sm:$0xff] }
 0x202   : > { %915 = vst.msk [vmem:[#allocation2 + $0x30] sm:$0xff] %vm914_vm11, %v906_v27  ;;  %v1524_v30 = vmul.f32 %v4868_v51, %v1473_v20 }
 0x204   : > { %v1110_v31 = vpop.permute.xlu0 %1109  ;;  %v1563_v8 = vrot.slane %v1524_v30, 1 }
 0x205   : > { %v1108_v38 = vpop.permute.xlu1 %1107  ;;  %v1142_v3 = vld [vmem:[#allocation2 + $0x58] sm:$0xff] }
 0x206   : > { %v1118_v10 = vsel %vm1038_vm0, %v1108_v38, %v1110_v31  ;;  %v1188_v2 = vmul.f32 %v4862_v16, %v1142_v3  ;;  %v1519_v9 = vmul.f32 %v4868_v51, %v1142_v3  ;;  %v1920_v16 = vrot.slane %v1885_v7, 2  ;;  %v4874_v7 = vld [vmem:[#allocation62_spill] sm:$0xff] }
 0x207   : > { %v1137_v22 = vadd.f32 %v1118_v10, %v4869_v53  ;;  %v1884_v45 = vmul.f32 %v4872_v47, %v1142_v3  ;;  %v1879_v3 = vmul.f32 %v4872_v47, %v1837_v18 }
 0x208   : > { %v1114_v63 = vpop.permute.xlu0 %1113  ;;  %v1253_v37 = vld [vmem:[#allocation2 + $0x60] sm:$0x1]  ;;  %1217 = vrot.lane.b32.xlu0 %v1188_v2, %s3146_s16  ;;  %v1553_v58 = vrot.slane %v1519_v9, 1 }
 0x209   : > { %v4364_v1 = vadd.f32 %v1114_v63, %v1056_v25  ;;  %v4366_v49 = vld [vmem:[#allocation2 + $0x30] sm:$0xff]  ;;  %v1112_v34 = vpop.permute.xlu1 %1111  ;;  %v1304_v13 = vmul.f32 %v4870_v52, %v1253_v37  ;;  %v1917_v35 = vrot.slane %v1879_v3, 2  ;;  %v1000_v3 = vld [vmem:[#allocation2] sm:$0xff] }
 0x20a   : > { %v1052_v39 = vmul.f32 %v4871_v24, %v4366_v49  ;;  %v4373_v54 = vmul.f32 %v4870_v52, %v4366_v49  ;;  %v1119_v28 = vsel %vm1038_vm0, %v1110_v31, %v1112_v34  ;;  %v1120_v43 = vsel %vm1038_vm0, %v1112_v34, %v1114_v63 }
 0x20b   : > { %v1138_v27 = vadd.f32 %v1119_v28, %v4873_v61  ;;  %v1554_v4 = vsel %vm1324_vm4, %v1552_v29, %v1553_v58  ;;  %v1564_v20 = vsel %vm1324_vm4, %v1553_v58, %v1563_v8  ;;  %v1139_v10 = vadd.f32 %v1120_v43, %v4874_v7 }
 0x20c   : > { %v1210_v51 = vpop.permute.xlu0 %1209  ;;  %v1326_v33 = vrot.slane %v4373_v54, 1  ;;  %v1136_v30 = vadd.f32 %v1108_v38, %v1052_v39  ;;  %1573 = vrot.lane.b32.xlu1 %v1554_v4, %s3146_s16  ;;  %1583 = vrot.lane.b32.xlu0 %v1564_v20, %s3146_s16  ;;  %v1340_v2 = vrot.slane %v1304_v13, 1  ;;  %v1921_v63 = vsel %vm1689_vm5, %v1906_v50, %v1920_v16  ;;  %v1838_v13 = vld [vmem:[#allocation2 + $0x88] sm:$0x3] }
 0x20d   : > { %v1212_v31 = vpop.permute.xlu1 %1211  ;;  %v1918_v38 = vrot.slane %v1884_v45, 2  ;;  %v4875_v45 = vld [vmem:[#allocation27_spill] sm:$0xff]  ;;  %v1889_v61 = vmul.f32 %v4872_v47, %v1838_v13  ;;  %v1248_v47 = vld [vmem:[#allocation2] sm:$0xfe] }
 0x20e   : > { %v1243_v25 = vadd.f32 %v1210_v51, %v1136_v30  ;;  %v1224_v9 = vsel %vm1219_vm10, %v1210_v51, %v1212_v31  ;;  %v1341_v58 = vsel %vm1324_vm4, %v1326_v33, %v1340_v2 }
 0x20f   : > { %v1244_v53 = vadd.f32 %v1224_v9, %v1137_v22  ;;  %v1919_v28 = vsel %vm1689_vm5, %v1917_v35, %v1918_v38  ;;  %v1928_v20 = vrot.slane %v1889_v61, 2  ;;  %v1294_v9 = vmul.f32 %v4870_v52, %v1248_v47 }
 0x210   : > { %v1214_v37 = vpop.permute.xlu0 %1213  ;;  %1940 = vrot.lane.b32.xlu1 %v1921_v63, %s3146_s16  ;;  %1942 = vrot.lane.b32.xlu0 %v4039_v23, %s3146_s16  ;;  %v4397_v29 = vadd.f32 %v1341_v58, %v1243_v25 }
 0x211   : > { %v1225_v34 = vsel %vm1219_vm10, %v1212_v31, %v1214_v37  ;;  %v4399_v8 = vpop.permute.xlu1 %1215  ;;  %v1366_v50 = vadd.f32 %v4120_v14, %v1244_v53  ;;  %v1929_v51 = vsel %vm1689_vm5, %v1918_v38, %v1928_v20  ;;  %v1047_v38 = vmul.f32 %v4871_v24, %v1000_v3 }
 0x212   : > { %v1245_v22 = vadd.f32 %v1225_v34, %v1138_v27  ;;  %v1226_v16 = vsel %vm1219_vm10, %v1214_v37, %v4399_v8  ;;  %v1325_v13 = vrot.slane %v1294_v9, 1 }
 0x213   : > { %v1246_v39 = vadd.f32 %v1226_v16, %v1139_v10 }
 0x214   : > { %v1433_v18 = vpop.permute.xlu0 %1432  ;;  %v4406_v23 = vadd.f32 %v4123_v17, %v1245_v22  ;;  %1938 = vrot.lane.b32.xlu1 %v1919_v28, %s3146_s16  ;;  %1946 = vrot.lane.b32.xlu0 %v4875_v45, %s3146_s16  ;;  %v4876_v45 = vld [vmem:[#allocation28_spill] sm:$0xff] }
 0x215   : > { %v1431_v43 = vpop.permute.xlu1 %1430  ;;  %v1368_v14 = vadd.f32 %v4130_v44, %v1246_v39  ;;  %v1664_v61 = vmul.f32 %v4876_v45, %v4366_v49 }
 0x216   : > { %v1446_v17 = vsel %vm1038_vm0, %v1431_v43, %v1433_v18 }
 0x217   : > { %v1463_v7 = vadd.f32 %v1446_v17, %v4339_v48 }
 0x218   : > { %v4413_v27 = vpop.permute.xlu0 %1436  ;;  %1944 = vrot.lane.b32.xlu1 %v4055_v57, %s3146_s16 }
 0x219   : > { %v1435_v4 = vpop.permute.xlu1 %1434 }
 0x21a   : > { %v1447_v44 = vsel %vm1038_vm0, %v1433_v18, %v1435_v4  ;;  %v1448_v31 = vsel %vm1038_vm0, %v1435_v4, %v4413_v27  ;;  %v1613_v18 = vld [vmem:[#allocation2] sm:$0xfc] }
 0x21b   : > { %v1464_v53 = vadd.f32 %v1447_v44, %v4344_v40  ;;  %v1465_v63 = vadd.f32 %v1448_v31, %v4348_v42  ;;  %v1131_v42 = vadd.f32 %v4318_v55, %v1047_v38 }
 0x21c   : > { %v1568_v30 = vpop.permute.xlu0 %1567  ;;  %1948 = vrot.lane.b32.xlu1 %v1929_v51, %s3146_s16  ;;  %v1691_v51 = vrot.slane %v1664_v61, 2  ;;  %s3060_s16 = sshll.u32 %s3147_s15, 4  ;;  %s3061_s16 = int_to_ptr.vmem [resolvable:$false] %s3060_s16 }
 0x21d   : > { %v1566_v10 = vpop.permute.xlu1 %1565  ;;  %v1238_v28 = vadd.f32 %v4329_v60, %v1131_v42  ;;  %s3062_s12 = scalar_lea.vmem %s3061_s16, 2048  ;;  %p3063_p1 = scmp.lt.s32.totalorder %s4621_s19, %s3061_s16 }
 0x21e   : > { %v1585_v57 = vsel %vm1219_vm10, %v1566_v10, %v1568_v30  ;;  %p3064_p2 = scmp.lt.s32.totalorder %s3062_s12, %s3056_s20 }
 0x21f   : > { %v1604_v2 = vadd.f32 %v1585_v57, %v1463_v7 }
 0x220   : > { %p3065_p3 = por %p3064_p2, %p3063_p1 }
 0x221   : > { %v4425_v25 = vpop.permute.xlu0 %1571  ;;  %v1570_v48 = vpop.permute.xlu1 %1569  ;;  %v1726_v37 = vadd.f32 %v4109_v6, %v1604_v2  ;;  %v1327_v6 = vsel %vm1324_vm4, %v1325_v13, %v1326_v33 }
 0x222   : > { %v1586_v58 = vsel %vm1219_vm10, %v1568_v30, %v1570_v48  ;;  %v1587_v34 = vsel %vm1219_vm10, %v1570_v48, %v4425_v25  ;;  %v1360_v20 = vadd.f32 %v1327_v6, %v1238_v28  ;;  %p3066_p9 = pnand %p3065_p3, %p3059_p10 }
 0x223   : > { %v1605_v22 = vadd.f32 %v1586_v58, %v1464_v53  ;;  %v1606_v35 = vadd.f32 %v1587_v34, %v1465_v63 }
 0x225   : > { %v1798_v16 = vpop.permute.xlu0 %1797  ;;  %v1796_v39 = vpop.permute.xlu1 %1795  ;;  %v1727_v52 = vadd.f32 %v4072_v26, %v1605_v22  ;;  %v1728_v40 = vadd.f32 %v4081_v19, %v1606_v35  ;;  %v1659_v26 = vmul.f32 %v4876_v45, %v1613_v18  ;;  %v1462_v19 = vadd.f32 %v1431_v43, %v1360_v20 }
 0x226   : > { %v1811_v57 = vsel %vm1038_vm0, %v1796_v39, %v1798_v16 }
 0x227   : > { %v1603_v30 = vadd.f32 %v1566_v10, %v1462_v19  ;;  %v1690_v7 = vrot.slane %v1659_v26, 2  ;;  %v1618_v10 = vld [vmem:[#allocation2 + $0x60] sm:$0x3] }
 0x228   : > { %v1669_v48 = vmul.f32 %v4876_v45, %v1618_v10 }
 0x229   : > { %v4441_v24 = vpop.permute.xlu0 %1801  ;;  %v1800_v4 = vpop.permute.xlu1 %1799  ;;  %v1692_v44 = vsel %vm1689_vm5, %v1690_v7, %v1691_v51 }
 0x22a   : > { %v1725_v31 = vadd.f32 %v1692_v44, %v1603_v30  ;;  %v1812_v38 = vsel %vm1038_vm0, %v1798_v16, %v1800_v4  ;;  %v1813_v58 = vsel %vm1038_vm0, %v1800_v4, %v4441_v24  ;;  %v1705_v6 = vrot.slane %v1669_v48, 2 }
 0x22c   : > { %v1827_v53 = vadd.f32 %v1796_v39, %v1725_v31  ;;  %v1830_v39 = vadd.f32 %v1813_v58, %v1728_v40 }
 0x22d   : > { %v1441_v17 = vpop.permute.xlu0 %1440  ;;  %v1439_v55 = vpop.permute.xlu1 %1438 }
 0x22e   : > { %v1449_v54 = vsel %vm1038_vm0, %v1439_v55, %v1441_v17  ;;  %v1467_v33 = vadd.f32 %v1439_v55, %v4397_v29 }
 0x22f   : > { %v1468_v47 = vadd.f32 %v1449_v54, %v1366_v50  ;;  %v1828_v50 = vadd.f32 %v1811_v57, %v1726_v37  ;;  %v1829_v37 = vadd.f32 %v1812_v38, %v1727_v52  ;;  %v4482_v52 = vsel %vm1038_vm0, %v4241_v15, %v4304_v46 }
 0x230   : > { %v1706_v54 = vsel %vm1689_vm5, %v1691_v51, %v1705_v6 }
 0x231   : > { %v4449_v60 = vpop.permute.xlu0 %1444  ;;  %v1443_v49 = vpop.permute.xlu1 %1442 }
 0x232   : > { %v1450_v3 = vsel %vm1038_vm0, %v1441_v17, %v1443_v49  ;;  %v1451_v43 = vsel %vm1038_vm0, %v1443_v49, %v4449_v60  ;;  %v4477_v17 = vsel %vm1038_vm0, %v4286_v41, %v4241_v15 }
 0x233   : > { %v1469_v2 = vadd.f32 %v1450_v3, %v4406_v23  ;;  %v1470_v9 = vadd.f32 %v1451_v43, %v1368_v14  ;;  %v4467_v23 = vsel %vm1038_vm0, %v4216_v62, %v4286_v41  ;;  %v4877_v43 = vld [vmem:[#allocation16_spill] sm:$0xff] }
 0x235   : > { %v1933_v29 = vpop.permute.xlu0 %1932  ;;  %v1931_v63 = vpop.permute.xlu1 %1930 }
 0x236   : > { %v1950_v34 = vsel %vm1219_vm10, %v1931_v63, %v1933_v29  ;;  %v1968_v22 = vadd.f32 %v1931_v63, %v1827_v53 }
 0x237   : > { %v1969_v35 = vadd.f32 %v1950_v34, %v1828_v50 }
 0x238   : > { %v2012_v14 = vadd.f32 %v4216_v62, %v1968_v22 }
 0x239   : > { %v4462_v13 = vpop.permute.xlu0 %1936  ;;  %v2013_v16 = vadd.f32 %v4467_v23, %v1969_v35  ;;  %v1935_v42 = vpop.permute.xlu1 %1934  ;;  %v2909_v35 = vld [vmem:[#allocation9 + $0x38] sm:$0xff]  }
 0x23a   : > { %v1951_v28 = vsel %vm1219_vm10, %v1933_v29, %v1935_v42  ;;  %v1952_v18 = vsel %vm1219_vm10, %v1935_v42, %v4462_v13  ;;  %2758 = vmatprep.subr.bf16.mxu1 %v2909_v35 }
 0x23b   : > { %v2032_v45 = vcombine.low %v2012_v14, %v2013_v16  ;;  %v2033_v61 = vcombine.high %v2012_v14, %v2013_v16  ;;  %v1970_v4 = vadd.f32 %v1951_v28, %v1829_v37  ;;  %v1971_v20 = vadd.f32 %v1952_v18, %v1830_v39  ;;  %2759 = vmatpush3.bf16.msra.mxu1 %v2909_v35 }
 0x23d   : > { %v1576_v26 = vpop.permute.xlu0 %1575  ;;  %v2014_v19 = vadd.f32 %v4477_v17, %v1970_v4  ;;  %v2015_v55 = vadd.f32 %v4482_v52, %v1971_v20  ;;  %v1578_v30 = vpop.permute.xlu1 %1577  ;;  %v2042_v15 = vrot.slane %v2032_v45, %v4877_v43  ;;  %v2049_v63 = vrot.slane %v2033_v61, %v4877_v43 }
 0x23e   : > { %v1608_v40 = vadd.f32 %v1576_v26, %v1467_v33  ;;  %v1589_v7 = vsel %vm1219_vm10, %v1576_v26, %v1578_v30 }
 0x23f   : > { %v2034_v49 = vcombine.low %v2014_v19, %v2015_v55  ;;  %v2035_v31 = vcombine.high %v2014_v19, %v2015_v55  ;;  %v1609_v41 = vadd.f32 %v1589_v7, %v1468_v47  ;;  %v2911_v7 = vld [vmem:[#allocation9 + $0x28] sm:$0xff]  }
 0x240   : > { %v1730_v44 = vadd.f32 %v1706_v54, %v1608_v40 }
 0x241   : > { %v1580_v57 = vpop.permute.xlu0 %1579  ;;  %v1582_v33 = vpop.permute.xlu1 %1581  ;;  %v2056_v29 = vrot.slane %v2034_v49, %v4877_v43  ;;  %v1731_v53 = vadd.f32 %v4133_v5, %v1609_v41  ;;  %v2063_v50 = vrot.slane %v2035_v31, %v4877_v43 }
 0x242   : > { %v1590_v3 = vsel %vm1219_vm10, %v1578_v30, %v1580_v57  ;;  %v1591_v51 = vsel %vm1219_vm10, %v1580_v57, %v1582_v33 }
 0x243   : > { %v1610_v10 = vadd.f32 %v1590_v3, %v1469_v2  ;;  %v1611_v48 = vadd.f32 %v1591_v51, %v1470_v9  ;;  %v2064_v38 = vcombine.low %v2042_v15, %v2056_v29  ;;  %v2065_v47 = vcombine.high %v2042_v15, %v2056_v29  ;;  %v2910_v2 = vld [vmem:[#allocation9 + $0x30] sm:$0xff]   ;;  %v2912_v15 = vld [vmem:[#allocation9 + $0x20] sm:$0xff]  }
 0x244   : > { %v2066_v34 = vcombine.low %v2049_v63, %v2063_v50  ;;  %v2067_v22 = vcombine.high %v2049_v63, %v2063_v50  ;;  %2760 = vmatprep.subr.bf16.mxu1 %v2910_v2 }
 0x245   : > { %v1732_v58 = vadd.f32 %v4097_v32, %v1610_v10  ;;  %2138 = vrot.lane.b32.xlu0 %v2064_v38, %s3143_s30  ;;  %v1733_v14 = vadd.f32 %v4104_v0, %v1611_v48  ;;  %v1804_v5 = vpop.permute.xlu1 %1803  ;;  %2761 = vmatpush3.bf16.msra.mxu1 %v2910_v2  ;;  %v1806_v42 = vpop.permute.xlu0 %1805  ;;  %v2913_v38 = vld [vmem:[#allocation9 + $0x18] sm:$0xff]  }
 0x246   : > { %v1832_v26 = vadd.f32 %v1804_v5, %v1730_v44  ;;  %2762 = vmatprep.subr.bf16.mxu1 %v2911_v7 }
 0x249   : > { %2142 = vrot.lane.b32.xlu0 %v2065_v47, %s3143_s30  ;;  %v1808_v9 = vpop.permute.xlu1 %1807  ;;  %v1810_v6 = vpop.permute.xlu0 %1809  ;;  %2763 = vmatpush3.bf16.msra.mxu1 %v2911_v7  ;;  %v4881_v7 = vld [vmem:[#allocation32_spill] sm:$0xff] }
 0x24a   : > { %v1816_v57 = vsel %vm1038_vm0, %v1808_v9, %v1810_v6  ;;  %2764 = vmatprep.subr.bf16.mxu1 %v2912_v15 }
 0x24d   : > { %2146 = vrot.lane.b32.xlu0 %v2066_v34, %s3143_s30  ;;  %2765 = vmatpush3.bf16.msra.mxu1 %v2912_v15 }
 0x24e   : > { %2766 = vmatprep.subr.bf16.mxu1 %v2913_v38 }
 0x251   : > { %2150 = vrot.lane.b32.xlu0 %v2067_v22, %s3143_s30  ;;  %2767 = vmatpush3.bf16.msra.mxu1 %v2913_v38 }
 0x257   : > { %v1208_v32 = vpop.permute.xlu1 %1207 }
 0x258   : > { %v1223_v37 = vsel %vm1219_vm10, %v4336_v56, %v1208_v32  ;;  %v1814_v56 = vsel %vm1038_vm0, %v1804_v5, %v1806_v42 }
 0x259   : > { %v1242_v39 = vadd.f32 %v1223_v37, %v4327_v36  ;;  %v1833_v19 = vadd.f32 %v1814_v56, %v1731_v53  ;;  %v2914_v37 = vld [vmem:[#allocation9 + $0x10] sm:$0xff]  }
 0x25a   : > { %2768 = vmatprep.subr.bf16.mxu1 %v2914_v37 }
 0x25b   : > { %v1364_v0 = vadd.f32 %v4143_v12, %v1242_v39  ;;  %2769 = vmatpush3.bf16.msra.mxu1 %v2914_v37 }
 0x25d   : > { %v1466_v16 = vadd.f32 %v4413_v27, %v1364_v0 }
 0x27a   : > { %v1218_v28 = vpop.permute.xlu0 %1217 }
 0x27b   : > { %v1227_v18 = vsel %vm1219_vm10, %v4399_v8, %v1218_v28 }
 0x27c   : > { %v1247_v45 = vadd.f32 %v1227_v18, %v4364_v1  ;;  %v2915_v18 = vld [vmem:[#allocation9 + $0x8] sm:$0xff]  }
 0x27d   : > { %2770 = vmatprep.subr.bf16.mxu1 %v2915_v18 }
 0x27e   : > { %v1369_v61 = vadd.f32 %v4151_v59, %v1247_v45  ;;  %v1574_v4 = vpop.permute.xlu1 %1573  ;;  %v1584_v20 = vpop.permute.xlu0 %1583  ;;  %2771 = vmatpush3.bf16.msra.mxu1 %v2915_v18 }
 0x27f   : > { %v1588_v36 = vsel %vm1219_vm10, %v4425_v25, %v1574_v4  ;;  %v1592_v40 = vsel %vm1219_vm10, %v1582_v33, %v1584_v20  ;;  %v2916_v20 = vld [vmem:[#allocation9] sm:$0xff]  }
 0x280   : > { %v1607_v12 = vadd.f32 %v1588_v36, %v1466_v16  ;;  %v1471_v27 = vadd.f32 %v4449_v60, %v1369_v61  ;;  %2772 = vmatprep.subr.bf16.mxu1 %v2916_v20 }
 0x282   : > { %v1729_v8 = vadd.f32 %v4156_v21, %v1607_v12  ;;  %v1612_v55 = vadd.f32 %v1592_v40, %v1471_v27  ;;  %v1941_v1 = vpop.permute.xlu1 %1940  ;;  %v1943_v30 = vpop.permute.xlu0 %1942  ;;  %v1815_v21 = vsel %vm1038_vm0, %v1806_v42, %v1808_v9  ;;  %2773 = vmatpush3.bf16.msra.mxu1 %v2916_v20  ;;  %v4878_v40 = vld [vmem:[#allocation18_spill] sm:$0xff] }
 0x283   : > { %v1973_v59 = vadd.f32 %v1941_v1, %v1832_v26  ;;  %v1954_v54 = vsel %vm1219_vm10, %v1941_v1, %v1943_v30  ;;  %v1834_v29 = vadd.f32 %v1815_v21, %v1732_v58  ;;  %v2949_v26 = vld [vmem:[%s4671_s2] sm:$0x3]  ;;  %v4880_v1 = vld [vmem:[#allocation31_spill] sm:$0xff] }
 0x284   : > { %v1734_v49 = vadd.f32 %v4169_v11, %v1612_v55  ;;  %v1974_v31 = vadd.f32 %v1954_v54, %v1833_v19  ;;  %v1831_v44 = vadd.f32 %v4441_v24, %v1729_v8  ;;  %v526_v19 = vrot.slane %v2949_v26, %v4878_v40  ;;  %v4879_v8 = vld [vmem:[#allocation30_spill] sm:$0xff] }
 0x285   : > { %v2017_v25 = vadd.f32 %v4216_v62, %v1973_v59  ;;  %v1835_v62 = vadd.f32 %v1816_v57, %v1733_v14  ;;  %v4884_v57 = vld [vmem:[#allocation35_spill] sm:$0xff] }
 0x286   : > { %v2018_v60 = vadd.f32 %v4467_v23, %v1974_v31  ;;  %v1939_v41 = vpop.permute.xlu1 %1938  ;;  %v1947_v53 = vpop.permute.xlu0 %1946  ;;  %v1836_v58 = vadd.f32 %v1810_v6, %v1734_v49  ;;  %v646_v55 = vadd.f32 %v4879_v8, %v526_v19  ;;  %v656_v49 = vadd.f32 %v4881_v7, %v526_v19  ;;  %v4882_v31 = vld [vmem:[#allocation33_spill] sm:$0xff] }
 0x287   : > { %v1953_v3 = vsel %vm1219_vm10, %v4462_v13, %v1939_v41 }
 0x288   : > { %v2085_v10 = vcombine.low %v2017_v25, %v2018_v60  ;;  %v2086_v11 = vcombine.high %v2017_v25, %v2018_v60  ;;  %v1972_v33 = vadd.f32 %v1953_v3, %v1831_v44  ;;  %v2715_v59 = vmul.f32 -1.442695, %v646_v55  ;;  %v4883_v44 = vld [vmem:[#allocation34_spill] sm:$0xff] }
 0x289   : > { %v660_v25 = vadd.f32 %v4882_v31, %v526_v19  ;;  %v2717_v60 = vmul.f32 -1.442695, %v656_v49  ;;  %v666_v41 = vadd.f32 %v4883_v44, %v526_v19  ;;  %v670_v3 = vadd.f32 %v4884_v57, %v526_v19 }
 0x28a   : > { %v2016_v23 = vadd.f32 %v4304_v46, %v1972_v33  ;;  %v1945_v24 = vpop.permute.xlu1 %1944  ;;  %v2095_v39 = vrot.slane %v2085_v10, %v4877_v43  ;;  %v2102_v0 = vrot.slane %v2086_v11, %v4877_v43  ;;  %2917 = vpow2.f32 %v2715_v59 }
 0x28b   : > { %v1955_v50 = vsel %vm1219_vm10, %v1943_v30, %v1945_v24  ;;  %v1956_v51 = vsel %vm1219_vm10, %v1945_v24, %v1947_v53  ;;  %v650_v30 = vadd.f32 %v4880_v1, %v526_v19  ;;  %v2718_v21 = vmul.f32 -1.442695, %v660_v25 }
 0x28c   : > { %v1975_v63 = vadd.f32 %v1955_v50, %v1834_v29  ;;  %v1976_v48 = vadd.f32 %v1956_v51, %v1835_v62  ;;  %v2075_v13 = vrot.slane %v2016_v23, %v4877_v43  ;;  %v2068_v2 = vcombine.high %v2016_v23, %v2016_v23  ;;  %v679_v62 = vpop.f32.mrf.mxu0 }
 0x28d   : > { %v2716_v54 = vmul.f32 -1.442695, %v650_v30  ;;  %v2719_v10 = vmul.f32 -1.442695, %v666_v41  ;;  %v2720_v33 = vmul.f32 -1.442695, %v670_v3 }
 0x28e   : > { %v2019_v47 = vadd.f32 %v4477_v17, %v1975_v63  ;;  %v2020_v34 = vadd.f32 %v4482_v52, %v1976_v48  ;;  %2140 = vrot.lane.b32.xlu1 %v2075_v13, %s3143_s30  ;;  %v1949_v22 = vpop.permute.xlu1 %1948  ;;  %v2083_v32 = vcombine.high %v2075_v13, %v2075_v13  ;;  %v2082_v42 = vrot.slane %v2068_v2, %v4877_v43 }
 0x28f   : > { %v1957_v35 = vsel %vm1219_vm10, %v1947_v53, %v1949_v22  ;;  %2919 = vpow2.f32 %v2716_v54  ;;  %v4885_v53 = vld [vmem:[#allocation36_spill] sm:$0xff]  ;;  %v680_v63 = vadd.f32 %v679_v62, %v526_v19 }
 0x290   : > { %v2087_v14 = vcombine.low %v2019_v47, %v2020_v34  ;;  %v2088_v5 = vcombine.high %v2019_v47, %v2020_v34  ;;  %v1977_v9 = vadd.f32 %v1957_v35, %v1836_v58  ;;  %2921 = vpow2.f32 %v2717_v60 }
 0x291   : > { %2923 = vpow2.f32 %v2718_v21  ;;  %v676_v24 = vadd.f32 %v4885_v53, %v526_v19  ;;  %v2722_v13 = vmul.f32 -1.442695, %v680_v63 }
 0x292   : > { %v2109_v17 = vrot.slane %v2087_v14, %v4877_v43  ;;  %v2116_v52 = vrot.slane %v2088_v5, %v4877_v43  ;;  %2144 = vrot.lane.b32.xlu1 %v2083_v32, %s3143_s30  ;;  %v2021_v16 = vadd.f32 %v4304_v46, %v1977_v9  ;;  %v2084_v46 = vcombine.high %v2082_v42, %v2082_v42 }
 0x293   : > { %2925 = vpow2.f32 %v2719_v10  ;;  %v2721_v48 = vmul.f32 -1.442695, %v676_v24 }
 0x294   : > { %v2117_v6 = vcombine.low %v2095_v39, %v2109_v17  ;;  %v2118_v28 = vcombine.high %v2095_v39, %v2109_v17  ;;  %v2119_v45 = vcombine.low %v2102_v0, %v2116_v52  ;;  %v2120_v61 = vcombine.high %v2102_v0, %v2116_v52 }
 0x295   : > { %v2128_v4 = vrot.slane %v2021_v16, %v4877_v43  ;;  %v2121_v56 = vcombine.high %v2021_v16, %v2021_v16  ;;  %2927 = vpow2.f32 %v2720_v33 }
 0x296   : > { %2148 = vrot.lane.b32.xlu1 %v2082_v42, %s3143_s30  ;;  %2154 = vrot.lane.b32.xlu0 %v2117_v6, %s3143_s30  ;;  %v4886_v42 = vld [vmem:[#allocation17_spill] sm:$0xff] }
 0x297   : > { %v2136_v36 = vcombine.high %v2128_v4, %v2128_v4  ;;  %v2135_v12 = vrot.slane %v2121_v56, %v4877_v43  ;;  %v2918_v11 = vpop.eup %2917 }
 0x298   : > { %v706_v23 = vadd.f32 1.0, %v2918_v11 }
 0x299   : > { %v2137_v27 = vcombine.high %v2135_v12, %v2135_v12 }
 0x29a   : > { %2156 = vrot.lane.b32.xlu1 %v2128_v4, %s3143_s30  ;;  %2158 = vrot.lane.b32.xlu0 %v2118_v28, %s3143_s30  ;;  %2929 = vrcp.f32 %v706_v23 }
 0x29c   : > { %v2920_v29 = vpop.eup %2919 }
 0x29d   : > { %v707_v51 = vadd.f32 1.0, %v2920_v29  ;;  %v2922_v34 = vpop.eup %2921 }
 0x29e   : > { %2152 = vrot.lane.b32.xlu1 %v2084_v46, %s3143_s30  ;;  %2162 = vrot.lane.b32.xlu0 %v2119_v45, %s3143_s30  ;;  %v2924_v35 = vpop.eup %2923  ;;  %v708_v14 = vadd.f32 1.0, %v2922_v34 }
 0x29f   : > { %2931 = vrcp.f32 %v707_v51  ;;  %v709_v39 = vadd.f32 1.0, %v2924_v35 }
 0x2a0   : > { %2933 = vpow2.f32 %v2721_v48  ;;  %v2926_v37 = vpop.eup %2925 }
 0x2a1   : > { %2935 = vpow2.f32 %v2722_v13  ;;  %v710_v28 = vadd.f32 1.0, %v2926_v37 }
 0x2a2   : > { %2160 = vrot.lane.b32.xlu1 %v2136_v36, %s3143_s30  ;;  %2166 = vrot.lane.b32.xlu0 %v2120_v61, %s3143_s30  ;;  %v2928_v0 = vpop.eup %2927  ;;  %2937 = vrcp.f32 %v708_v14 }
 0x2a3   : > { %2939 = vrcp.f32 %v709_v39  ;;  %v711_v20 = vadd.f32 1.0, %v2928_v0 }
 0x2a4   : > { %2941 = vrcp.f32 %v710_v28 }
 0x2a5   : > { %2943 = vrcp.f32 %v711_v20 }
 0x2a6   : > { %2164 = vrot.lane.b32.xlu1 %v2135_v12, %s3143_s30 }
 0x2a7   : > { %v2930_v4 = vpop.eup %2929 }
 0x2aa   : > { %2168 = vrot.lane.b32.xlu1 %v2137_v27, %s3143_s30 }
 0x2ac   : > { %v2932_v36 = vpop.eup %2931 }
 0x2ad   : > { %v2934_v19 = vpop.eup %2933 }
 0x2ae   : > { %v2936_v30 = vpop.eup %2935  ;;  %v712_v7 = vadd.f32 1.0, %v2934_v19 }
 0x2af   : > { %v713_v25 = vadd.f32 1.0, %v2936_v30  ;;  %v2938_v33 = vpop.eup %2937 }
 0x2b0   : > { %2945 = vrcp.f32 %v712_v7  ;;  %v2940_v53 = vpop.eup %2939 }
 0x2b1   : > { %2947 = vrcp.f32 %v713_v25 }
 0x2b7   : > { %v2139_v15 = vpop.permute.xlu0 %2138 }
 0x2b8   : > { %v2170_v58 = vrot.slane %v2139_v15, 2 }
 0x2bb   : > { %v2143_v50 = vpop.permute.xlu0 %2142 }
 0x2bc   : > { %v2172_v17 = vrot.slane %v2143_v50, 2 }
 0x2bf   : > { %v2147_v38 = vpop.permute.xlu0 %2146 }
 0x2c0   : > { %v2174_v12 = vrot.slane %v2147_v38, 2 }
 0x2c3   : > { %v2151_v5 = vpop.permute.xlu0 %2150 }
 0x2c4   : > { %v2176_v60 = vrot.slane %v2151_v5, 2 }
 0x300   : > { %v2141_v47 = vpop.permute.xlu1 %2140 }
 0x301   : > { %v2171_v22 = vrot.slane %v2141_v47, 2 }
 0x303   : > { %v2186_v2 = vsel %vm1689_vm5, %v2170_v58, %v2171_v22 }
 0x304   : > { %v2145_v9 = vpop.permute.xlu1 %2144  ;;  %v2187_v32 = vsel %vm929_vm3, %v2139_v15, %v2186_v2 }
 0x305   : > { %v2173_v52 = vrot.slane %v2145_v9, 2  ;;  %v2216_v6 = vrot.slane %v2187_v32, %v4886_v42 }
 0x307   : > { %v2188_v16 = vsel %vm1689_vm5, %v2172_v17, %v2173_v52  ;;  %v2266_v27 = vmul.f32 %v2930_v4, %v2216_v6 }
 0x308   : > { %v2149_v18 = vpop.permute.xlu1 %2148  ;;  %v2155_v45 = vpop.permute.xlu0 %2154  ;;  %v2189_v61 = vsel %vm929_vm3, %v2143_v50, %v2188_v16 }
 0x309   : > { %v2175_v46 = vrot.slane %v2149_v18, 2  ;;  %v2223_v56 = vrot.slane %v2189_v61, %v4886_v42  ;;  %v2178_v54 = vrot.slane %v2155_v45, 2 }
 0x30b   : > { %v2267_v26 = vmul.f32 %v2932_v36, %v2223_v56  ;;  %v2190_v8 = vsel %vm1689_vm5, %v2174_v12, %v2175_v46  ;;  %v2727_v56 = vld [vmem:[%s4675_s6] ss:$0 sm:$0xff] }
 0x30c   : > { %v2157_v40 = vpop.permute.xlu1 %2156  ;;  %v2159_v59 = vpop.permute.xlu0 %2158  ;;  %v2191_v49 = vsel %vm929_vm3, %v2147_v38, %v2190_v8  ;;  %v4887_v8 = vld [vmem:[#allocation29_spill] sm:$0xff] }
 0x30d   : > { %v2179_v55 = vrot.slane %v2157_v40, 2  ;;  %v2274_v1 = vpack.c.bf16 %v2267_v26, %v2266_v27  ;;  %v2230_v57 = vrot.slane %v2191_v49, %v4886_v42  ;;  %v2180_v29 = vrot.slane %v2159_v59, 2  ;;  %v2942_v38 = vpop.eup %2941 }
 0x30e   : > { %v2944_v35 = vpop.eup %2943 }
 0x30f   : > { %2774 = vmatprep.mubr.bf16.mxu1 %v2274_v1  ;;  %v2194_v44 = vsel %vm1689_vm5, %v2178_v54, %v2179_v55  ;;  %v2268_v50 = vmul.f32 %v2938_v33, %v2230_v57  ;;  %v2946_v28 = vpop.eup %2945 }
 0x310   : > { %v2153_v31 = vpop.permute.xlu1 %2152  ;;  %v2195_v3 = vsel %vm929_vm3, %v2155_v45, %v2194_v44  ;;  %v2163_v10 = vpop.permute.xlu0 %2162 }
 0x311   : > { %v2177_v41 = vrot.slane %v2153_v31, 2  ;;  %v2244_v63 = vrot.slane %v2195_v3, %v4886_v42  ;;  %v2182_v47 = vrot.slane %v2163_v10, 2  ;;  %v2948_v45 = vpop.eup %2947 }
 0x313   : > { %v2192_v21 = vsel %vm1689_vm5, %v2176_v60, %v2177_v41 }
 0x314   : > { %v2193_v15 = vsel %vm929_vm3, %v2151_v5, %v2192_v21  ;;  %v2161_v11 = vpop.permute.xlu1 %2160  ;;  %v2167_v2 = vpop.permute.xlu0 %2166  ;;  %v2270_v5 = vmul.f32 %v2942_v38, %v2244_v63 }
 0x315   : > { %v2181_v62 = vrot.slane %v2161_v11, 2  ;;  %v2237_v23 = vrot.slane %v2193_v15, %v4886_v42  ;;  %v2184_v39 = vrot.slane %v2167_v2, 2 }
 0x317   : > { %v2196_v24 = vsel %vm1689_vm5, %v2180_v29, %v2181_v62  ;;  %v2269_v51 = vmul.f32 %v2940_v53, %v2237_v23 }
 0x318   : > { %v2197_v48 = vsel %vm929_vm3, %v2159_v59, %v2196_v24  ;;  %v2165_v13 = vpop.permute.xlu1 %2164 }
 0x319   : > { %v2183_v34 = vrot.slane %v2165_v13, 2  ;;  %v2275_v58 = vpack.c.bf16 %v2269_v51, %v2268_v50  ;;  %v2251_v22 = vrot.slane %v2197_v48, %v4886_v42 }
 0x31b   : > { %v2198_v14 = vsel %vm1689_vm5, %v2182_v47, %v2183_v34  ;;  %2775 = vmatmul.mubr.bf16.vlgmr.msra.gmra.mxu1 %v2275_v58  ;;  %v2271_v9 = vmul.f32 %v2944_v35, %v2251_v22 }
 0x31c   : > { %v2199_v32 = vsel %vm929_vm3, %v2163_v10, %v2198_v14  ;;  %v2169_v37 = vpop.permute.xlu1 %2168 }
 0x31d   : > { %v2185_v17 = vrot.slane %v2169_v37, 2  ;;  %v2276_v52 = vpack.c.bf16 %v2271_v9, %v2270_v5  ;;  %v2258_v16 = vrot.slane %v2199_v32, %v4886_v42 }
 0x31f   : > { %v2200_v0 = vsel %vm1689_vm5, %v2184_v39, %v2185_v17  ;;  %2778 = vmatprep.mubr.bf16.mxu1 %v2276_v52  ;;  %v2272_v61 = vmul.f32 %v2946_v28, %v2258_v16 }
 0x320   : > { %v2201_v6 = vsel %vm929_vm3, %v2167_v2, %v2200_v0 }
 0x321   : > { %v2265_v18 = vrot.slane %v2201_v6, %v4886_v42 }
 0x323   : > { %v2273_v4 = vmul.f32 %v2948_v45, %v2265_v18 }
 0x325   : > { %v2277_v20 = vpack.c.bf16 %v2273_v4, %v2272_v61 }
 0x327   : > { %2779 = vmatmul.mubr.bf16.gmra.mxu1 %v2277_v20 }
 0x3db   : > { %v2776_v46 = vpop.f32.mrf.mxu1 }
 0x3dc   : > { %v2392_v12 = vadd.f32 %v2776_v46, %v2727_v56 }
 0x3dd   : > { %v2383_v36 = vpop.f32.mrf.mxu1 }
 0x3de   : > { %v2384_v26 = vadd.f32 %v2727_v56, %v2383_v36  ;;  %v2434_v55 = vrot.slane %v2392_v12, %v4887_v8 }
 0x3df   : > { %v2777_v27 = vpop.f32.mrf.mxu1 }
 0x3e0   : > { %v2395_v40 = vadd.f32 %v2777_v27, %v2727_v56  ;;  %v2420_v30 = vrot.slane %v2384_v26, %v4887_v8 }
 0x3e1   : > { %v2386_v19 = vpop.f32.mrf.mxu1 }
 0x3e2   : > { %v2441_v42 = vrot.slane %v2395_v40, %v4887_v8  ;;  %v2387_v1 = vadd.f32 %v2727_v56, %v2386_v19 }
 0x3e4   : > { %v2480_v59 = vcombine.low %v2434_v55, %v2441_v42  ;;  %v2481_v54 = vcombine.high %v2434_v55, %v2441_v42  ;;  %v2427_v7 = vrot.slane %v2387_v1, %v4887_v8 }
 0x3e6   : > { %v2478_v49 = vcombine.low %v2420_v30, %v2427_v7  ;;  %v2479_v31 = vcombine.high %v2420_v30, %v2427_v7  ;;  %v2502_v60 = vrot.slane %v2480_v59, %v4877_v43  ;;  %v2509_v44 = vrot.slane %v2481_v54, %v4877_v43 }
 0x3e7   : > { %v2780_v25 = vpop.f32.mrf.mxu1 }
 0x3e8   : > { %v2488_v41 = vrot.slane %v2478_v49, %v4877_v43  ;;  %v2495_v21 = vrot.slane %v2479_v31, %v4877_v43  ;;  %v2408_v57 = vadd.f32 %v2780_v25, %v2727_v56 }
 0x3e9   : > { %v2399_v3 = vpop.f32.mrf.mxu1 }
 0x3ea   : > { %v2510_v15 = vcombine.low %v2488_v41, %v2502_v60  ;;  %v2511_v10 = vcombine.high %v2488_v41, %v2502_v60  ;;  %v2512_v11 = vcombine.low %v2495_v21, %v2509_v44  ;;  %v2513_v33 = vcombine.high %v2495_v21, %v2509_v44 }
 0x3eb   : > { %v2781_v29 = vpop.f32.mrf.mxu1  ;;  %v2400_v62 = vadd.f32 %v2727_v56, %v2399_v3  ;;  %v2462_v24 = vrot.slane %v2408_v57, %v4887_v8 }
 0x3ec   : > { %2558 = vst [vmem:[%s4600_s11] sm:$0xff] %v2510_v15  ;;  %2559 = vst [vmem:[%s4600_s11 + $0x8] sm:$0xff] %v2511_v10  ;;  %v2411_v23 = vadd.f32 %v2781_v29, %v2727_v56 }
 0x3ed   : > { %2560 = vst [vmem:[%s4600_s11 + $0x10] sm:$0xff] %v2512_v11  ;;  %2561 = vst [vmem:[%s4600_s11 + $0x18] sm:$0xff] %v2513_v33  ;;  %v2402_v53 = vpop.f32.mrf.mxu1  ;;  %v2448_v63 = vrot.slane %v2400_v62, %v4887_v8 }
 0x3ee   : > { %v2469_v50 = vrot.slane %v2411_v23, %v4887_v8  ;;  %v2403_v51 = vadd.f32 %v2727_v56, %v2402_v53 }
 0x3f0   : > { %v2516_v48 = vcombine.low %v2462_v24, %v2469_v50  ;;  %v2517_v13 = vcombine.high %v2462_v24, %v2469_v50  ;;  %v2455_v38 = vrot.slane %v2403_v51, %v4887_v8 }
 0x3f2   : > { %v2514_v47 = vcombine.low %v2448_v63, %v2455_v38  ;;  %v2515_v34 = vcombine.high %v2448_v63, %v2455_v38  ;;  %v2538_v58 = vrot.slane %v2516_v48, %v4877_v43  ;;  %v2545_v22 = vrot.slane %v2517_v13, %v4877_v43 }
 0x3f4   : > { %v2524_v35 = vrot.slane %v2514_v47, %v4877_v43  ;;  %v2531_v2 = vrot.slane %v2515_v34, %v4877_v43 }
 0x3f6   : > { %v2546_v14 = vcombine.low %v2524_v35, %v2538_v58  ;;  %v2547_v5 = vcombine.high %v2524_v35, %v2538_v58  ;;  %v2548_v9 = vcombine.low %v2531_v2, %v2545_v22  ;;  %v2549_v32 = vcombine.high %v2531_v2, %v2545_v22 }
 0x3f8   : > { %2562 = vst [vmem:[%s4600_s11 + $0x20] sm:$0xff] %v2546_v14  ;;  %2563 = vst [vmem:[%s4600_s11 + $0x28] sm:$0xff] %v2547_v5 }
 0x3f9   : > { %2564 = vst [vmem:[%s4600_s11 + $0x30] sm:$0xff] %v2548_v9  ;;  %2565 = vst [vmem:[%s4600_s11 + $0x38] sm:$0xff] %v2549_v32 }
 0x3fa   : > { %3069 = shalt.err (!%p3066_p9)
}
 0x3fb   : > { %s3070_s10 = scalar_lea.hbm %s4619_s17, 1024  ;;  %s3074_s11 = scalar_lea.hbm %s4676_s7, 2048 }
 0x3fc   : > { %p3071_p7 = scmp.ne.s32.totalorder %s4619_s17, %s3070_s10  ;;  %p3075_p6 = scmp.lt.s32.totalorder %s4619_s17, %s4676_s7 }
 0x3fd   : > { %p3076_p11 = scmp.lt.s32.totalorder %s3074_s11, %s3070_s10 }
 0x3fe   : > { %p3072_p4 = pnand %p3071_p7, %p4888_p0 }
 0x3ff   : > { %p3077_p13 = por %p3076_p11, %p3075_p6 }
 0x400   : > { %p3073_p8 = pneg %p3072_p4 }
 0x402   : > { %p3078_p12 = pnand %p3077_p13, %p3073_p8 }
 0x404   : > { %3081 = shalt.err (!%p3078_p12)
}
 0x405   : > { %s3148_s14 = smov 512  }
 0x406   : > { %2796 = dma.vmem_to_hbm [thread:$0]  (%p4888_p0), %s4621_s19, 1024, %s4619_s17, %s2567_s28, %s3148_s14, %s3148_s14, %s3143_s30  }
 0x407 PF: > { %s2596_s20 = sand.u32 1, %s3116_s24   ;;  %p4889_p5 = scmp.ne.s32.totalorder %s4741_s8, 0 }
 0x408   : > { %p4890_p10 = scmp.ge.s32.totalorder %s3128_s27, 2  ;;  %s2597_s15 = scalar_lea.sflag [#allocation5], %s2596_s20 }
 0x40a   : > { %p2813_p1 = pnand %p4890_p10, %p4889_p5 }
 0x40c   : > { %p2814_p2 = pneg %p2813_p1 }
 0x40e   : > { %3111 = dma.done.wait (%p2814_p2), %s2597_s15, 1024  }
 0x40f   : > { %3113 = vsyncadd (%p2814_p2), %s2597_s15, 4294966272  ;;  %p22_p3 = scmp.ge.s32.totalorder %s3272_s18, 4   ;;  %s4891_s24 = smov %s3120_s25 }
 0x410   : > { %s4892_s25 = smov %s3124_s26  ;;  %s4893_s26 = smov %s3282_s23 }
 0x411   : > { %s4894_s27 = smov %s3272_s18  ;;  %24 = sbr.rel (!%p22_p3) target bundleno = 9 (0x9), region = 107 }
 0x416   :  { %2602 = vsyncpa [#allocation4], 1 }
 0x417   :  { %2604 = vsyncpa [#allocation4 + $0x1], 1 }
 0x418   :  { %2605 = vsyncpa [#allocation7], 1 }
 0x419   :  { %2606 = vsyncpa [#allocation10], 1 }
 0x41a   :  { %2607 = vsyncpa [#allocation5], 1 }
 0x41b   :  { %2609 = vsyncpa [#allocation5 + $0x1], 1 }

</bundles_post_ra>
